<compile_context>
chip_gen: v6e
topology: v6e:2x2x1
jax: 0.10.0
libtpu: 0.0.40
codegen_flags: <defaults>
</compile_context>

<pallas_src>
import functools
import math

import jax
import jax.numpy as jnp
from jax import lax
from jax.experimental import pallas as pl
from jax.experimental.pallas import tpu as pltpu

EPS = 1e-5                                # PyTorch BatchNorm2d default
_VMEM_LIMIT = 32 * 1024 * 1024            # conservative: fits v5e/v6e/v7x


def _conv_phases(x_ref, w_ref, b_ref, *, Ci, Co, T, W, Wp):
    """ConvTranspose2d(k=4, s=2, p=1) of relu(x) for one (image, row-band) block.

    x_ref : (1, 1, Ci, L2) band of the zero-padded input, rows flattened into lanes with
            row stride Wp = W + 2; L2 = (T + 2) * Wp + 2.
    w_ref : (16, Co, Ci) per-(phase, tap) weight matrices (kh = 3-py-2dh, kw = 3-px-2dw).
    b_ref : (Co, 1) ConvTranspose2d bias.
    Returns 4 arrays (Co, T * Wp), one per output parity phase (py, px), laid out as
    f = t * Wp + u (lanes with u >= W of each row are pad garbage and must be masked).
    """
    Lt = T * Wp
    # Fused pre-activation ReLU (exact in bf16 as well; only the MXU operands are bf16,
    # all accumulation / BN math below stays in f32 -> v5e-safe).
    x = jnp.maximum(x_ref[0, 0], 0)
    # The 9 distinct (row, col) shifts shared by the 16 (phase, tap) pairs, hoisted once.
    shifted = {(r, c): x[:, r * Wp + c: r * Wp + c + Lt]
               for r in range(3) for c in range(3)}
    bias = b_ref[...]                                  # (Co, 1), broadcast along lanes

    outs = []
    for py in range(2):
        for px in range(2):
            acc = jnp.zeros((Co, Lt), jnp.float32)
            for dh in range(2):
                for dw in range(2):
                    ti = ((py * 2 + px) * 2 + dh) * 2 + dw
                    acc = acc + jnp.dot(w_ref[ti], shifted[(py + dh, px + dw)],
                                        preferred_element_type=jnp.float32)
            outs.append(acc + bias)
    return outs


def _stats_kernel(x_ref, w_ref, b_ref, sum_ref, ssq_ref, *, Ci, Co, T, W, Wp):
    """Pass 1: accumulate per-channel sum / sum-of-squares of the pre-BN activations."""
    @pl.when(jnp.logical_and(pl.program_id(0) == 0, pl.program_id(1) == 0))
    def _():
        sum_ref[...] = jnp.zeros_like(sum_ref)
        ssq_ref[...] = jnp.zeros_like(ssq_ref)

    Lt = T * Wp
    lane = lax.broadcasted_iota(jnp.int32, (1, Lt), 1)
    valid = (lane % Wp) < W                            # mask the per-row pad columns

    s = jnp.zeros((Co, 1), jnp.float32)
    q = jnp.zeros((Co, 1), jnp.float32)
    for y in _conv_phases(x_ref, w_ref, b_ref, Ci=Ci, Co=Co, T=T, W=W, Wp=Wp):
        yv = jnp.where(valid, y, 0.0)
        s = s + jnp.sum(yv, axis=1, keepdims=True)     # lane-axis (XLU) reductions
        q = q + jnp.sum(yv * yv, axis=1, keepdims=True)
    sum_ref[...] += s
    ssq_ref[...] += q


def _apply_kernel(x_ref, w_ref, b_ref, scale_ref, shift_ref, o_ref, *, Ci, Co, T, W, Wp):
    """Pass 2: recompute the conv and apply y * scale + shift (folded BatchNorm)."""
    scale = scale_ref[...]                             # (Co, 1), hoisted, implicit bcast
    shift = shift_ref[...]
    ys = _conv_phases(x_ref, w_ref, b_ref, Ci=Ci, Co=Co, T=T, W=W, Wp=Wp)
    for p, y in enumerate(ys):
        o_ref[0, 0, p] = (y * scale + shift).astype(o_ref.dtype)


def _pick_tile_h(H, W, Ci, Co, in_itemsize):
    """Largest divisor of H whose per-band working set stays well inside v7x VMEM."""
    Wp = W + 2
    # per padded row: double-buffered input band + double-buffered 4-phase f32 output band
    # + in-kernel temporaries (ReLU'd input, 9 shifted views, phase accumulators).
    per_row = Wp * (2 * Ci * in_itemsize + 2 * 4 * Co * 4
                    + 10 * Ci * in_itemsize + 4 * Co * 4)
    budget = 8 * 1024 * 1024
    tile = 1
    for t in range(1, H + 1):
        if H % t == 0 and (t + 2) * per_row <= budget:
            tile = t
    return tile


def upsample_forward(x, w_ct, bias, gamma, beta, *, tile_h=None, use_bf16=False):
    """x: (N, Ci, H, W) float32 NCHW -> (N, Co, 2H, 2W) float32 NCHW.

    relu(x) -> ConvTranspose2d(Ci, Co, k=4, s=2, p=1) -> BatchNorm2d (training-mode stats).
    """
    N, Ci, H, W = x.shape
    Co = w_ct.shape[1]
    OH, OW = 2 * H, 2 * W
    Wp = W + 2

    in_dtype = jnp.bfloat16 if use_bf16 else x.dtype
    T = tile_h if tile_h is not None else _pick_tile_h(
        H, W, Ci, Co, jnp.dtype(in_dtype).itemsize)
    assert H % T == 0, (H, T)
    NB = H // T
    Lt = T * Wp
    L2 = (T + 2) * Wp + 2        # +2 so every (row, col) tap shift is an in-bounds slice

    # --- per-(phase, tap) weight matrices: kh = 3 - py - 2*dh, kw = 3 - px - 2*dw --------
    wkk = jnp.transpose(w_ct, (2, 3, 1, 0))                       # (kh, kw, Co, Ci)
    taps = jnp.stack([wkk[3 - py - 2 * dh, 3 - px - 2 * dw]
                      for py in range(2) for px in range(2)
                      for dh in range(2) for dw in range(2)], axis=0)   # (16, Co, Ci)

    # --- padded input, rows flattened onto lanes, cut into overlapping row bands ---------
    xc = x.astype(in_dtype)                                       # bf16 halves HBM bytes
    xpad = jnp.pad(xc, ((0, 0), (0, 0), (1, 2), (1, 1)))          # (N, Ci, H+3, Wp)
    xflat = xpad.reshape(N, Ci, (H + 3) * Wp)
    xb = jnp.stack([xflat[:, :, b * T * Wp: b * T * Wp + L2] for b in range(NB)],
                   axis=1)                                        # (N, NB, Ci, L2)
    taps_k = taps.astype(in_dtype)
    bias_k = bias.reshape(Co, 1).astype(jnp.float32)

    x_spec = pl.BlockSpec((1, 1, Ci, L2), lambda n, b: (n, b, 0, 0))
    w_spec = pl.BlockSpec((16, Co, Ci), lambda n, b: (0, 0, 0))
    vec_spec = pl.BlockSpec((Co, 1), lambda n, b: (0, 0))

    # --- pass 1: per-channel sum / sum-of-squares (accumulator outputs, sequential grid) -
    sums, ssqs = pl.pallas_call(
        functools.partial(_stats_kernel, Ci=Ci, Co=Co, T=T, W=W, Wp=Wp),
        out_shape=(jax.ShapeDtypeStruct((Co, 1), jnp.float32),
                   jax.ShapeDtypeStruct((Co, 1), jnp.float32)),
        grid=(N, NB),
        in_specs=[x_spec, w_spec, vec_spec],
        out_specs=(vec_spec, vec_spec),
        compiler_params=pltpu.CompilerParams(
            dimension_semantics=("arbitrary", "arbitrary"),
            vmem_limit_bytes=_VMEM_LIMIT),
    )(xb, taps_k, bias_k)

    # O(Co) finalize of the batch statistics (fold BN into y * scale + shift).
    # TODO(synk): switch to Welford / centered two-pass accumulation if N*OH*OW becomes
    # large enough for f32 sum-of-squares cancellation to matter.
    cnt = jnp.float32(N * OH * OW)
    mean = sums[:, 0] / cnt
    var = jnp.maximum(ssqs[:, 0] / cnt - mean * mean, 0.0)
    inv_std = lax.rsqrt(var + EPS)
    scale = (gamma * inv_std).reshape(Co, 1).astype(jnp.float32)
    shift = (beta - gamma * inv_std * mean).reshape(Co, 1).astype(jnp.float32)

    # --- pass 2: recompute conv (cheaper than an HBM round trip of y), normalise, write --
    yp = pl.pallas_call(
        functools.partial(_apply_kernel, Ci=Ci, Co=Co, T=T, W=W, Wp=Wp),
        out_shape=jax.ShapeDtypeStruct((N, NB, 4, Co, Lt), jnp.float32),
        grid=(N, NB),
        in_specs=[x_spec, w_spec, vec_spec, vec_spec, vec_spec],
        out_specs=pl.BlockSpec((1, 1, 4, Co, Lt), lambda n, b: (n, b, 0, 0, 0)),
        compiler_params=pltpu.CompilerParams(
            dimension_semantics=("parallel", "parallel"),   # megacore-shardable on v7x
            vmem_limit_bytes=_VMEM_LIMIT),
    )(xb, taps_k, bias_k, scale, shift)

    # --- un-pad + interleave the 4 parity phases back into NCHW --------------------------
    # TODO(synk): this is the one remaining XLA pass over the output; it could be folded
    # into the kernel with in-register sublane/lane interleaving of the 4 phases.
    y = yp.reshape(N, NB, 2, 2, Co, T, Wp)[..., :W]          # drop per-row pad columns
    y = jnp.transpose(y, (0, 4, 1, 5, 2, 6, 3))              # (N, Co, NB, T, py, W, px)
    return y.reshape(N, Co, OH, OW)


def upsample_ref(x, w_ct, bias, gamma, beta):
    """Pure-JAX reference of the PyTorch forward (training-mode BatchNorm)."""
    xr = jnp.maximum(x, 0.0)
    w_conv = jnp.transpose(jnp.flip(w_ct, (2, 3)), (1, 0, 2, 3))   # (Co, Ci, K, K)
    y = lax.conv_general_dilated(
        xr, w_conv, window_strides=(1, 1), padding=((2, 2), (2, 2)),
        lhs_dilation=(2, 2), dimension_numbers=("NCHW", "OIHW", "NCHW"),
        precision=lax.Precision.HIGHEST)
    y = y + bias.reshape(1, -1, 1, 1)
    mean = y.mean(axis=(0, 2, 3), keepdims=True)
    var = y.var(axis=(0, 2, 3), keepdims=True)
    y_hat = (y - mean) / jnp.sqrt(var + EPS)
    return y_hat * gamma.reshape(1, -1, 1, 1) + beta.reshape(1, -1, 1, 1)


if __name__ == "__main__":
    in_ch, out_ch = 4, 8
    N, H, W = 2, 16, 16

    key = jax.random.PRNGKey(0)
    kx, kw, kb = jax.random.split(key, 3)

    bound = 1.0 / math.sqrt(in_ch * 4 * 4)
    w_ct = jax.random.uniform(kw, (in_ch, out_ch, 4, 4), jnp.float32, -bound, bound)
    bias = jax.random.uniform(kb, (out_ch,), jnp.float32, -bound, bound)
    gamma = jnp.ones((out_ch,), jnp.float32)   # BatchNorm2d weight init
    beta = jnp.zeros((out_ch,), jnp.float32)   # BatchNorm2d bias init
    x = jax.random.normal(kx, (N, in_ch, H, W), jnp.float32)

    ref = upsample_ref(x, w_ct, bias, gamma, beta)
    fwd = jax.jit(upsample_forward, static_argnames=("tile_h", "use_bf16"))

    # f32 path (default tiling).
    out = jax.block_until_ready(fwd(x, w_ct, bias, gamma, beta))
    assert out.shape == (N, out_ch, 2 * H, 2 * W), out.shape
    assert jnp.allclose(out, ref, atol=1e-3, rtol=1e-3), \
        float(jnp.max(jnp.abs(out - ref)))

    # f32 path with multiple row-bands (exercises banding + cross-step stat accumulation).
    out_t = jax.block_until_ready(fwd(x, w_ct, bias, gamma, beta, tile_h=8))
    assert jnp.allclose(out_t, ref, atol=1e-3, rtol=1e-3), \
        float(jnp.max(jnp.abs(out_t - ref)))

    # bf16 MXU operands (f32 accumulation + f32 BN math) — v6e/v7x feedback; loose tol.
    out_bf16 = jax.block_until_ready(fwd(x, w_ct, bias, gamma, beta, use_bf16=True))
    assert jnp.allclose(out_bf16, ref, atol=5e-2, rtol=5e-2), \
        float(jnp.max(jnp.abs(out_bf16 - ref)))

    print("KERNEL_OK")
</pallas_src>

<mosaic_0001>
module attributes {stable_mosaic.version = 11 : i64} {
  func.func @_stats_kernel(%arg0: i32, %arg1: i32, %arg2: memref<1x1x4x326xf32, #tpu.memory_space<vmem>>, %arg3: memref<16x8x4xf32, #tpu.memory_space<vmem>>, %arg4: memref<8x1xf32, #tpu.memory_space<vmem>>, %arg5: memref<8x1xf32, #tpu.memory_space<vmem>>, %arg6: memref<8x1xf32, #tpu.memory_space<vmem>>) attributes {dimension_semantics = [#tpu.dimension_semantics<arbitrary>, #tpu.dimension_semantics<arbitrary>], iteration_bounds = array<i64: 2, 1>, scalar_prefetch = 0 : i64, scratch_operands = 0 : i64, tpu.core_type = #tpu.core_type<tc>, window_params = [{transform_indices = @transform_0, window_bounds = array<i64: 1, 1, 4, 326>}, {pipeline_mode = #tpu.pipeline_mode<synchronous>, transform_indices = @transform_1, window_bounds = array<i64: 16, 8, 4>}, {pipeline_mode = #tpu.pipeline_mode<synchronous>, transform_indices = @transform_2, window_bounds = array<i64: 8, 1>}, {pipeline_mode = #tpu.pipeline_mode<synchronous>, transform_indices = @transform_3, window_bounds = array<i64: 8, 1>}, {pipeline_mode = #tpu.pipeline_mode<synchronous>, transform_indices = @transform_4, window_bounds = array<i64: 8, 1>}]} {
    %c0_i32 = arith.constant 0 : i32
    %0 = arith.cmpi eq, %arg0, %c0_i32 : i32
    %c0_i32_0 = arith.constant 0 : i32
    %1 = arith.cmpi eq, %arg1, %c0_i32_0 : i32
    %2 = arith.andi %0, %1 : i1
    %3 = arith.extui %2 : i1 to i32
    %c0_i32_1 = arith.constant 0 : i32
    %4 = arith.cmpi ne, %3, %c0_i32_1 : i32
    scf.if %4 {
      %cst_86 = arith.constant 0.000000e+00 : f32
      %166 = vector.broadcast %cst_86 : f32 to vector<8x1xf32>
      %c0_87 = arith.constant 0 : index
      %c0_88 = arith.constant 0 : index
      %167 = vector.load %arg5[%c0_87, %c0_88] : memref<8x1xf32, #tpu.memory_space<vmem>>, vector<8x1xf32>
      tpu.vector_store %arg5[%c0_87, %c0_88], %166 {strides = array<i32>} : memref<8x1xf32, #tpu.memory_space<vmem>>, vector<8x1xf32>,
      %cst_89 = arith.constant 0.000000e+00 : f32
      %168 = vector.broadcast %cst_89 : f32 to vector<8x1xf32>
      %c0_90 = arith.constant 0 : index
      %c0_91 = arith.constant 0 : index
      %169 = vector.load %arg6[%c0_90, %c0_91] : memref<8x1xf32, #tpu.memory_space<vmem>>, vector<8x1xf32>
      tpu.vector_store %arg6[%c0_90, %c0_91], %168 {strides = array<i32>} : memref<8x1xf32, #tpu.memory_space<vmem>>, vector<8x1xf32>,
    } else {
    }
    %5 = tpu.iota {dimensions = array<i32: 1>} : vector<1x288xi32>
    %c18_i32 = arith.constant 18 : i32
    %c0_i32_2 = arith.constant 0 : i32
    %6 = arith.cmpi eq, %c18_i32, %c0_i32_2 : i32
    %c1_i32 = arith.constant 1 : i32
    %7 = arith.select %6, %c1_i32, %c18_i32 : i32
    %8 = vector.broadcast %7 : i32 to vector<1x288xi32>
    %9 = arith.remsi %5, %8 : vector<1x288xi32>
    %c0_i32_3 = arith.constant 0 : i32
    %10 = vector.broadcast %c0_i32_3 : i32 to vector<1x288xi32>
    %11 = arith.cmpi ne, %9, %10 : vector<1x288xi32>
    %c0_i32_4 = arith.constant 0 : i32
    %12 = vector.broadcast %c0_i32_4 : i32 to vector<1x288xi32>
    %13 = arith.cmpi slt, %9, %12 : vector<1x288xi32>
    %c0_i32_5 = arith.constant 0 : i32
    %14 = arith.cmpi slt, %7, %c0_i32_5 : i32
    %15 = vector.broadcast %14 : i1 to vector<1x288xi1>
    %16 = vector.broadcast %15 : vector<1x288xi1> to vector<1x288xi1>
    %17 = arith.xori %13, %16 : vector<1x288xi1>
    %18 = arith.andi %17, %11 : vector<1x288xi1>
    %19 = vector.broadcast %7 : i32 to vector<1x288xi32>
    %20 = arith.addi %9, %19 : vector<1x288xi32>
    %21 = arith.select %18, %20, %9 : vector<1x288xi1>, vector<1x288xi32>
    %c16_i32 = arith.constant 16 : i32
    %22 = vector.broadcast %c16_i32 : i32 to vector<1x288xi32>
    %23 = arith.cmpi slt, %21, %22 : vector<1x288xi32>
    %cst = arith.constant 0.000000e+00 : f32
    %24 = vector.broadcast %cst : f32 to vector<8x1xf32>
    %cst_6 = arith.constant 0.000000e+00 : f32
    %25 = vector.broadcast %cst_6 : f32 to vector<8x1xf32>
    %c0 = arith.constant 0 : index
    %c0_7 = arith.constant 0 : index
    %c0_8 = arith.constant 0 : index
    %c0_9 = arith.constant 0 : index
    %26 = vector.load %arg2[%c0, %c0_7, %c0_8, %c0_9] : memref<1x1x4x326xf32, #tpu.memory_space<vmem>>, vector<1x1x4x326xf32>
    %27 = vector.shape_cast %26 : vector<1x1x4x326xf32> to vector<4x326xf32>
    %cst_10 = arith.constant 0.000000e+00 : f32
    %28 = vector.broadcast %cst_10 : f32 to vector<4x326xf32>
    %29 = arith.maximumf %27, %28 : vector<4x326xf32>
    %30 = vector.extract_strided_slice %29 {offsets = [0, 0], sizes = [4, 288], strides = [1, 1]} : vector<4x326xf32> to vector<4x288xf32>
    %31 = vector.extract_strided_slice %29 {offsets = [0, 1], sizes = [4, 288], strides = [1, 1]} : vector<4x326xf32> to vector<4x288xf32>
    %32 = vector.extract_strided_slice %29 {offsets = [0, 2], sizes = [4, 288], strides = [1, 1]} : vector<4x326xf32> to vector<4x288xf32>
    %33 = vector.extract_strided_slice %29 {offsets = [0, 18], sizes = [4, 288], strides = [1, 1]} : vector<4x326xf32> to vector<4x288xf32>
    %34 = vector.extract_strided_slice %29 {offsets = [0, 19], sizes = [4, 288], strides = [1, 1]} : vector<4x326xf32> to vector<4x288xf32>
    %35 = vector.extract_strided_slice %29 {offsets = [0, 20], sizes = [4, 288], strides = [1, 1]} : vector<4x326xf32> to vector<4x288xf32>
    %36 = vector.extract_strided_slice %29 {offsets = [0, 36], sizes = [4, 288], strides = [1, 1]} : vector<4x326xf32> to vector<4x288xf32>
    %37 = vector.extract_strided_slice %29 {offsets = [0, 37], sizes = [4, 288], strides = [1, 1]} : vector<4x326xf32> to vector<4x288xf32>
    %38 = vector.extract_strided_slice %29 {offsets = [0, 38], sizes = [4, 288], strides = [1, 1]} : vector<4x326xf32> to vector<4x288xf32>
    %c0_11 = arith.constant 0 : index
    %c0_12 = arith.constant 0 : index
    %39 = vector.load %arg4[%c0_11, %c0_12] : memref<8x1xf32, #tpu.memory_space<vmem>>, vector<8x1xf32>
    %cst_13 = arith.constant 0.000000e+00 : f32
    %40 = vector.broadcast %cst_13 : f32 to vector<8x288xf32>
    %c0_14 = arith.constant 0 : index
    %c0_15 = arith.constant 0 : index
    %c0_16 = arith.constant 0 : index
    %41 = vector.load %arg3[%c0_14, %c0_15, %c0_16] : memref<16x8x4xf32, #tpu.memory_space<vmem>>, vector<1x8x4xf32>
    %42 = vector.shape_cast %41 : vector<1x8x4xf32> to vector<8x4xf32>
    %cst_17 = arith.constant dense<0.000000e+00> : vector<8x288xf32>
    %43 = tpu.matmul %42, %30, %cst_17 {dimension_numbers = #tpu.dot_dimension_numbers<[1], [0], [0], [1], [0, 0, 1, 1], [], []>} : vector<8x4xf32>, vector<4x288xf32>, vector<8x288xf32> -> vector<8x288xf32>
    %44 = arith.addf %40, %43 : vector<8x288xf32>
    %c1 = arith.constant 1 : index
    %c0_18 = arith.constant 0 : index
    %c0_19 = arith.constant 0 : index
    %45 = vector.load %arg3[%c1, %c0_18, %c0_19] : memref<16x8x4xf32, #tpu.memory_space<vmem>>, vector<1x8x4xf32>
    %46 = vector.shape_cast %45 : vector<1x8x4xf32> to vector<8x4xf32>
    %cst_20 = arith.constant dense<0.000000e+00> : vector<8x288xf32>
    %47 = tpu.matmul %46, %31, %cst_20 {dimension_numbers = #tpu.dot_dimension_numbers<[1], [0], [0], [1], [0, 0, 1, 1], [], []>} : vector<8x4xf32>, vector<4x288xf32>, vector<8x288xf32> -> vector<8x288xf32>
    %48 = arith.addf %44, %47 : vector<8x288xf32>
    %c2 = arith.constant 2 : index
    %c0_21 = arith.constant 0 : index
    %c0_22 = arith.constant 0 : index
    %49 = vector.load %arg3[%c2, %c0_21, %c0_22] : memref<16x8x4xf32, #tpu.memory_space<vmem>>, vector<1x8x4xf32>
    %50 = vector.shape_cast %49 : vector<1x8x4xf32> to vector<8x4xf32>
    %cst_23 = arith.constant dense<0.000000e+00> : vector<8x288xf32>
    %51 = tpu.matmul %50, %33, %cst_23 {dimension_numbers = #tpu.dot_dimension_numbers<[1], [0], [0], [1], [0, 0, 1, 1], [], []>} : vector<8x4xf32>, vector<4x288xf32>, vector<8x288xf32> -> vector<8x288xf32>
    %52 = arith.addf %48, %51 : vector<8x288xf32>
    %c3 = arith.constant 3 : index
    %c0_24 = arith.constant 0 : index
    %c0_25 = arith.constant 0 : index
    %53 = vector.load %arg3[%c3, %c0_24, %c0_25] : memref<16x8x4xf32, #tpu.memory_space<vmem>>, vector<1x8x4xf32>
    %54 = vector.shape_cast %53 : vector<1x8x4xf32> to vector<8x4xf32>
    %cst_26 = arith.constant dense<0.000000e+00> : vector<8x288xf32>
    %55 = tpu.matmul %54, %34, %cst_26 {dimension_numbers = #tpu.dot_dimension_numbers<[1], [0], [0], [1], [0, 0, 1, 1], [], []>} : vector<8x4xf32>, vector<4x288xf32>, vector<8x288xf32> -> vector<8x288xf32>
    %56 = arith.addf %52, %55 : vector<8x288xf32>
    %57 = vector.broadcast %39 : vector<8x1xf32> to vector<8x288xf32>
    %58 = arith.addf %56, %57 : vector<8x288xf32>
    %cst_27 = arith.constant 0.000000e+00 : f32
    %59 = vector.broadcast %cst_27 : f32 to vector<8x288xf32>
    %c4 = arith.constant 4 : index
    %c0_28 = arith.constant 0 : index
    %c0_29 = arith.constant 0 : index
    %60 = vector.load %arg3[%c4, %c0_28, %c0_29] : memref<16x8x4xf32, #tpu.memory_space<vmem>>, vector<1x8x4xf32>
    %61 = vector.shape_cast %60 : vector<1x8x4xf32> to vector<8x4xf32>
    %cst_30 = arith.constant dense<0.000000e+00> : vector<8x288xf32>
    %62 = tpu.matmul %61, %31, %cst_30 {dimension_numbers = #tpu.dot_dimension_numbers<[1], [0], [0], [1], [0, 0, 1, 1], [], []>} : vector<8x4xf32>, vector<4x288xf32>, vector<8x288xf32> -> vector<8x288xf32>
    %63 = arith.addf %59, %62 : vector<8x288xf32>
    %c5 = arith.constant 5 : index
    %c0_31 = arith.constant 0 : index
    %c0_32 = arith.constant 0 : index
    %64 = vector.load %arg3[%c5, %c0_31, %c0_32] : memref<16x8x4xf32, #tpu.memory_space<vmem>>, vector<1x8x4xf32>
    %65 = vector.shape_cast %64 : vector<1x8x4xf32> to vector<8x4xf32>
    %cst_33 = arith.constant dense<0.000000e+00> : vector<8x288xf32>
    %66 = tpu.matmul %65, %32, %cst_33 {dimension_numbers = #tpu.dot_dimension_numbers<[1], [0], [0], [1], [0, 0, 1, 1], [], []>} : vector<8x4xf32>, vector<4x288xf32>, vector<8x288xf32> -> vector<8x288xf32>
    %67 = arith.addf %63, %66 : vector<8x288xf32>
    %c6 = arith.constant 6 : index
    %c0_34 = arith.constant 0 : index
    %c0_35 = arith.constant 0 : index
    %68 = vector.load %arg3[%c6, %c0_34, %c0_35] : memref<16x8x4xf32, #tpu.memory_space<vmem>>, vector<1x8x4xf32>
    %69 = vector.shape_cast %68 : vector<1x8x4xf32> to vector<8x4xf32>
    %cst_36 = arith.constant dense<0.000000e+00> : vector<8x288xf32>
    %70 = tpu.matmul %69, %34, %cst_36 {dimension_numbers = #tpu.dot_dimension_numbers<[1], [0], [0], [1], [0, 0, 1, 1], [], []>} : vector<8x4xf32>, vector<4x288xf32>, vector<8x288xf32> -> vector<8x288xf32>
    %71 = arith.addf %67, %70 : vector<8x288xf32>
    %c7 = arith.constant 7 : index
    %c0_37 = arith.constant 0 : index
    %c0_38 = arith.constant 0 : index
    %72 = vector.load %arg3[%c7, %c0_37, %c0_38] : memref<16x8x4xf32, #tpu.memory_space<vmem>>, vector<1x8x4xf32>
    %73 = vector.shape_cast %72 : vector<1x8x4xf32> to vector<8x4xf32>
    %cst_39 = arith.constant dense<0.000000e+00> : vector<8x288xf32>
    %74 = tpu.matmul %73, %35, %cst_39 {dimension_numbers = #tpu.dot_dimension_numbers<[1], [0], [0], [1], [0, 0, 1, 1], [], []>} : vector<8x4xf32>, vector<4x288xf32>, vector<8x288xf32> -> vector<8x288xf32>
    %75 = arith.addf %71, %74 : vector<8x288xf32>
    %76 = vector.broadcast %39 : vector<8x1xf32> to vector<8x288xf32>
    %77 = arith.addf %75, %76 : vector<8x288xf32>
    %cst_40 = arith.constant 0.000000e+00 : f32
    %78 = vector.broadcast %cst_40 : f32 to vector<8x288xf32>
    %c8 = arith.constant 8 : index
    %c0_41 = arith.constant 0 : index
    %c0_42 = arith.constant 0 : index
    %79 = vector.load %arg3[%c8, %c0_41, %c0_42] : memref<16x8x4xf32, #tpu.memory_space<vmem>>, vector<1x8x4xf32>
    %80 = vector.shape_cast %79 : vector<1x8x4xf32> to vector<8x4xf32>
    %cst_43 = arith.constant dense<0.000000e+00> : vector<8x288xf32>
    %81 = tpu.matmul %80, %33, %cst_43 {dimension_numbers = #tpu.dot_dimension_numbers<[1], [0], [0], [1], [0, 0, 1, 1], [], []>} : vector<8x4xf32>, vector<4x288xf32>, vector<8x288xf32> -> vector<8x288xf32>
    %82 = arith.addf %78, %81 : vector<8x288xf32>
    %c9 = arith.constant 9 : index
    %c0_44 = arith.constant 0 : index
    %c0_45 = arith.constant 0 : index
    %83 = vector.load %arg3[%c9, %c0_44, %c0_45] : memref<16x8x4xf32, #tpu.memory_space<vmem>>, vector<1x8x4xf32>
    %84 = vector.shape_cast %83 : vector<1x8x4xf32> to vector<8x4xf32>
    %cst_46 = arith.constant dense<0.000000e+00> : vector<8x288xf32>
    %85 = tpu.matmul %84, %34, %cst_46 {dimension_numbers = #tpu.dot_dimension_numbers<[1], [0], [0], [1], [0, 0, 1, 1], [], []>} : vector<8x4xf32>, vector<4x288xf32>, vector<8x288xf32> -> vector<8x288xf32>
    %86 = arith.addf %82, %85 : vector<8x288xf32>
    %c10 = arith.constant 10 : index
    %c0_47 = arith.constant 0 : index
    %c0_48 = arith.constant 0 : index
    %87 = vector.load %arg3[%c10, %c0_47, %c0_48] : memref<16x8x4xf32, #tpu.memory_space<vmem>>, vector<1x8x4xf32>
    %88 = vector.shape_cast %87 : vector<1x8x4xf32> to vector<8x4xf32>
    %cst_49 = arith.constant dense<0.000000e+00> : vector<8x288xf32>
    %89 = tpu.matmul %88, %36, %cst_49 {dimension_numbers = #tpu.dot_dimension_numbers<[1], [0], [0], [1], [0, 0, 1, 1], [], []>} : vector<8x4xf32>, vector<4x288xf32>, vector<8x288xf32> -> vector<8x288xf32>
    %90 = arith.addf %86, %89 : vector<8x288xf32>
    %c11 = arith.constant 11 : index
    %c0_50 = arith.constant 0 : index
    %c0_51 = arith.constant 0 : index
    %91 = vector.load %arg3[%c11, %c0_50, %c0_51] : memref<16x8x4xf32, #tpu.memory_space<vmem>>, vector<1x8x4xf32>
    %92 = vector.shape_cast %91 : vector<1x8x4xf32> to vector<8x4xf32>
    %cst_52 = arith.constant dense<0.000000e+00> : vector<8x288xf32>
    %93 = tpu.matmul %92, %37, %cst_52 {dimension_numbers = #tpu.dot_dimension_numbers<[1], [0], [0], [1], [0, 0, 1, 1], [], []>} : vector<8x4xf32>, vector<4x288xf32>, vector<8x288xf32> -> vector<8x288xf32>
    %94 = arith.addf %90, %93 : vector<8x288xf32>
    %95 = vector.broadcast %39 : vector<8x1xf32> to vector<8x288xf32>
    %96 = arith.addf %94, %95 : vector<8x288xf32>
    %cst_53 = arith.constant 0.000000e+00 : f32
    %97 = vector.broadcast %cst_53 : f32 to vector<8x288xf32>
    %c12 = arith.constant 12 : index
    %c0_54 = arith.constant 0 : index
    %c0_55 = arith.constant 0 : index
    %98 = vector.load %arg3[%c12, %c0_54, %c0_55] : memref<16x8x4xf32, #tpu.memory_space<vmem>>, vector<1x8x4xf32>
    %99 = vector.shape_cast %98 : vector<1x8x4xf32> to vector<8x4xf32>
    %cst_56 = arith.constant dense<0.000000e+00> : vector<8x288xf32>
    %100 = tpu.matmul %99, %34, %cst_56 {dimension_numbers = #tpu.dot_dimension_numbers<[1], [0], [0], [1], [0, 0, 1, 1], [], []>} : vector<8x4xf32>, vector<4x288xf32>, vector<8x288xf32> -> vector<8x288xf32>
    %101 = arith.addf %97, %100 : vector<8x288xf32>
    %c13 = arith.constant 13 : index
    %c0_57 = arith.constant 0 : index
    %c0_58 = arith.constant 0 : index
    %102 = vector.load %arg3[%c13, %c0_57, %c0_58] : memref<16x8x4xf32, #tpu.memory_space<vmem>>, vector<1x8x4xf32>
    %103 = vector.shape_cast %102 : vector<1x8x4xf32> to vector<8x4xf32>
    %cst_59 = arith.constant dense<0.000000e+00> : vector<8x288xf32>
    %104 = tpu.matmul %103, %35, %cst_59 {dimension_numbers = #tpu.dot_dimension_numbers<[1], [0], [0], [1], [0, 0, 1, 1], [], []>} : vector<8x4xf32>, vector<4x288xf32>, vector<8x288xf32> -> vector<8x288xf32>
    %105 = arith.addf %101, %104 : vector<8x288xf32>
    %c14 = arith.constant 14 : index
    %c0_60 = arith.constant 0 : index
    %c0_61 = arith.constant 0 : index
    %106 = vector.load %arg3[%c14, %c0_60, %c0_61] : memref<16x8x4xf32, #tpu.memory_space<vmem>>, vector<1x8x4xf32>
    %107 = vector.shape_cast %106 : vector<1x8x4xf32> to vector<8x4xf32>
    %cst_62 = arith.constant dense<0.000000e+00> : vector<8x288xf32>
    %108 = tpu.matmul %107, %37, %cst_62 {dimension_numbers = #tpu.dot_dimension_numbers<[1], [0], [0], [1], [0, 0, 1, 1], [], []>} : vector<8x4xf32>, vector<4x288xf32>, vector<8x288xf32> -> vector<8x288xf32>
    %109 = arith.addf %105, %108 : vector<8x288xf32>
    %c15 = arith.constant 15 : index
    %c0_63 = arith.constant 0 : index
    %c0_64 = arith.constant 0 : index
    %110 = vector.load %arg3[%c15, %c0_63, %c0_64] : memref<16x8x4xf32, #tpu.memory_space<vmem>>, vector<1x8x4xf32>
    %111 = vector.shape_cast %110 : vector<1x8x4xf32> to vector<8x4xf32>
    %cst_65 = arith.constant dense<0.000000e+00> : vector<8x288xf32>
    %112 = tpu.matmul %111, %38, %cst_65 {dimension_numbers = #tpu.dot_dimension_numbers<[1], [0], [0], [1], [0, 0, 1, 1], [], []>} : vector<8x4xf32>, vector<4x288xf32>, vector<8x288xf32> -> vector<8x288xf32>
    %113 = arith.addf %109, %112 : vector<8x288xf32>
    %114 = vector.broadcast %39 : vector<8x1xf32> to vector<8x288xf32>
    %115 = arith.addf %113, %114 : vector<8x288xf32>
    %cst_66 = arith.constant 0.000000e+00 : f32
    %116 = vector.shape_cast %23 : vector<1x288xi1> to vector<1x288xi1>
    %117 = vector.broadcast %116 : vector<1x288xi1> to vector<8x288xi1>
    %118 = vector.broadcast %cst_66 : f32 to vector<8x288xf32>
    %119 = arith.select %117, %58, %118 : vector<8x288xi1>, vector<8x288xf32>
    %cst_67 = arith.constant dense<0.000000e+00> : vector<8xf32>
    %120 = vector.multi_reduction <add>, %119, %cst_67 [1] : vector<8x288xf32> to vector<8xf32>
    %121 = vector.shape_cast %120 : vector<8xf32> to vector<8x1xf32>
    %122 = arith.addf %24, %121 : vector<8x1xf32>
    %123 = arith.mulf %119, %119 : vector<8x288xf32>
    %cst_68 = arith.constant dense<0.000000e+00> : vector<8xf32>
    %124 = vector.multi_reduction <add>, %123, %cst_68 [1] : vector<8x288xf32> to vector<8xf32>
    %125 = vector.shape_cast %124 : vector<8xf32> to vector<8x1xf32>
    %126 = arith.addf %25, %125 : vector<8x1xf32>
    %cst_69 = arith.constant 0.000000e+00 : f32
    %127 = vector.shape_cast %23 : vector<1x288xi1> to vector<1x288xi1>
    %128 = vector.broadcast %127 : vector<1x288xi1> to vector<8x288xi1>
    %129 = vector.broadcast %cst_69 : f32 to vector<8x288xf32>
    %130 = arith.select %128, %77, %129 : vector<8x288xi1>, vector<8x288xf32>
    %cst_70 = arith.constant dense<0.000000e+00> : vector<8xf32>
    %131 = vector.multi_reduction <add>, %130, %cst_70 [1] : vector<8x288xf32> to vector<8xf32>
    %132 = vector.shape_cast %131 : vector<8xf32> to vector<8x1xf32>
    %133 = arith.addf %122, %132 : vector<8x1xf32>
    %134 = arith.mulf %130, %130 : vector<8x288xf32>
    %cst_71 = arith.constant dense<0.000000e+00> : vector<8xf32>
    %135 = vector.multi_reduction <add>, %134, %cst_71 [1] : vector<8x288xf32> to vector<8xf32>
    %136 = vector.shape_cast %135 : vector<8xf32> to vector<8x1xf32>
    %137 = arith.addf %126, %136 : vector<8x1xf32>
    %cst_72 = arith.constant 0.000000e+00 : f32
    %138 = vector.shape_cast %23 : vector<1x288xi1> to vector<1x288xi1>
    %139 = vector.broadcast %138 : vector<1x288xi1> to vector<8x288xi1>
    %140 = vector.broadcast %cst_72 : f32 to vector<8x288xf32>
    %141 = arith.select %139, %96, %140 : vector<8x288xi1>, vector<8x288xf32>
    %cst_73 = arith.constant dense<0.000000e+00> : vector<8xf32>
    %142 = vector.multi_reduction <add>, %141, %cst_73 [1] : vector<8x288xf32> to vector<8xf32>
    %143 = vector.shape_cast %142 : vector<8xf32> to vector<8x1xf32>
    %144 = arith.addf %133, %143 : vector<8x1xf32>
    %145 = arith.mulf %141, %141 : vector<8x288xf32>
    %cst_74 = arith.constant dense<0.000000e+00> : vector<8xf32>
    %146 = vector.multi_reduction <add>, %145, %cst_74 [1] : vector<8x288xf32> to vector<8xf32>
    %147 = vector.shape_cast %146 : vector<8xf32> to vector<8x1xf32>
    %148 = arith.addf %137, %147 : vector<8x1xf32>
    %cst_75 = arith.constant 0.000000e+00 : f32
    %149 = vector.shape_cast %23 : vector<1x288xi1> to vector<1x288xi1>
    %150 = vector.broadcast %149 : vector<1x288xi1> to vector<8x288xi1>
    %151 = vector.broadcast %cst_75 : f32 to vector<8x288xf32>
    %152 = arith.select %150, %115, %151 : vector<8x288xi1>, vector<8x288xf32>
    %cst_76 = arith.constant dense<0.000000e+00> : vector<8xf32>
    %153 = vector.multi_reduction <add>, %152, %cst_76 [1] : vector<8x288xf32> to vector<8xf32>
    %154 = vector.shape_cast %153 : vector<8xf32> to vector<8x1xf32>
    %155 = arith.addf %144, %154 : vector<8x1xf32>
    %156 = arith.mulf %152, %152 : vector<8x288xf32>
    %cst_77 = arith.constant dense<0.000000e+00> : vector<8xf32>
    %157 = vector.multi_reduction <add>, %156, %cst_77 [1] : vector<8x288xf32> to vector<8xf32>
    %158 = vector.shape_cast %157 : vector<8xf32> to vector<8x1xf32>
    %159 = arith.addf %148, %158 : vector<8x1xf32>
    %c0_78 = arith.constant 0 : index
    %c0_79 = arith.constant 0 : index
    %160 = vector.load %arg5[%c0_78, %c0_79] : memref<8x1xf32, #tpu.memory_space<vmem>>, vector<8x1xf32>
    %161 = arith.addf %160, %155 : vector<8x1xf32>
    %c0_80 = arith.constant 0 : index
    %c0_81 = arith.constant 0 : index
    %162 = vector.load %arg5[%c0_80, %c0_81] : memref<8x1xf32, #tpu.memory_space<vmem>>, vector<8x1xf32>
    tpu.vector_store %arg5[%c0_80, %c0_81], %161 {strides = array<i32>} : memref<8x1xf32, #tpu.memory_space<vmem>>, vector<8x1xf32>,
    %c0_82 = arith.constant 0 : index
    %c0_83 = arith.constant 0 : index
    %163 = vector.load %arg6[%c0_82, %c0_83] : memref<8x1xf32, #tpu.memory_space<vmem>>, vector<8x1xf32>
    %164 = arith.addf %163, %159 : vector<8x1xf32>
    %c0_84 = arith.constant 0 : index
    %c0_85 = arith.constant 0 : index
    %165 = vector.load %arg6[%c0_84, %c0_85] : memref<8x1xf32, #tpu.memory_space<vmem>>, vector<8x1xf32>
    tpu.vector_store %arg6[%c0_84, %c0_85], %164 {strides = array<i32>} : memref<8x1xf32, #tpu.memory_space<vmem>>, vector<8x1xf32>,
    return
  }
  func.func @transform_0(%arg0: i32, %arg1: i32) -> (i32, i32, i32, i32) {
    %c0_i32 = arith.constant 0 : i32
    %c0_i32_0 = arith.constant 0 : i32
    %c0_i32_1 = arith.constant 0 : i32
    return %arg0, %arg1, %c0_i32, %c0_i32_0 : i32, i32, i32, i32
  }
  func.func @transform_1(%arg0: i32, %arg1: i32) -> (i32, i32, i32) {
    %c0_i32 = arith.constant 0 : i32
    %c0_i32_0 = arith.constant 0 : i32
    %c0_i32_1 = arith.constant 0 : i32
    %c0_i32_2 = arith.constant 0 : i32
    return %c0_i32, %c0_i32_0, %c0_i32_1 : i32, i32, i32
  }
  func.func @transform_2(%arg0: i32, %arg1: i32) -> (i32, i32) {
    %c0_i32 = arith.constant 0 : i32
    %c0_i32_0 = arith.constant 0 : i32
    %c0_i32_1 = arith.constant 0 : i32
    return %c0_i32, %c0_i32_0 : i32, i32
  }
  func.func @transform_3(%arg0: i32, %arg1: i32) -> (i32, i32) {
    %c0_i32 = arith.constant 0 : i32
    %c0_i32_0 = arith.constant 0 : i32
    %c0_i32_1 = arith.constant 0 : i32
    return %c0_i32, %c0_i32_0 : i32, i32
  }
  func.func @transform_4(%arg0: i32, %arg1: i32) -> (i32, i32) {
    %c0_i32 = arith.constant 0 : i32
    %c0_i32_0 = arith.constant 0 : i32
    %c0_i32_1 = arith.constant 0 : i32
    return %c0_i32, %c0_i32_0 : i32, i32
  }
}

module attributes {stable_mosaic.version = 11 : i64} {
  func.func @_apply_kernel(%arg0: i32, %arg1: i32, %arg2: memref<1x1x4x326xf32, #tpu.memory_space<vmem>>, %arg3: memref<16x8x4xf32, #tpu.memory_space<vmem>>, %arg4: memref<8x1xf32, #tpu.memory_space<vmem>>, %arg5: memref<8x1xf32, #tpu.memory_space<vmem>>, %arg6: memref<8x1xf32, #tpu.memory_space<vmem>>, %arg7: memref<1x1x4x8x288xf32, #tpu.memory_space<vmem>>) attributes {dimension_semantics = [#tpu.dimension_semantics<parallel>, #tpu.dimension_semantics<parallel>], iteration_bounds = array<i64: 2, 1>, scalar_prefetch = 0 : i64, scratch_operands = 0 : i64, tpu.core_type = #tpu.core_type<tc>, window_params = [{transform_indices = @transform_0, window_bounds = array<i64: 1, 1, 4, 326>}, {pipeline_mode = #tpu.pipeline_mode<synchronous>, transform_indices = @transform_1, window_bounds = array<i64: 16, 8, 4>}, {pipeline_mode = #tpu.pipeline_mode<synchronous>, transform_indices = @transform_2, window_bounds = array<i64: 8, 1>}, {pipeline_mode = #tpu.pipeline_mode<synchronous>, transform_indices = @transform_3, window_bounds = array<i64: 8, 1>}, {pipeline_mode = #tpu.pipeline_mode<synchronous>, transform_indices = @transform_4, window_bounds = array<i64: 8, 1>}, {transform_indices = @transform_5, window_bounds = array<i64: 1, 1, 4, 8, 288>}]} {
    %c0 = arith.constant 0 : index
    %c0_0 = arith.constant 0 : index
    %0 = vector.load %arg5[%c0, %c0_0] : memref<8x1xf32, #tpu.memory_space<vmem>>, vector<8x1xf32>
    %c0_1 = arith.constant 0 : index
    %c0_2 = arith.constant 0 : index
    %1 = vector.load %arg6[%c0_1, %c0_2] : memref<8x1xf32, #tpu.memory_space<vmem>>, vector<8x1xf32>
    %c0_3 = arith.constant 0 : index
    %c0_4 = arith.constant 0 : index
    %c0_5 = arith.constant 0 : index
    %c0_6 = arith.constant 0 : index
    %2 = vector.load %arg2[%c0_3, %c0_4, %c0_5, %c0_6] : memref<1x1x4x326xf32, #tpu.memory_space<vmem>>, vector<1x1x4x326xf32>
    %3 = vector.shape_cast %2 : vector<1x1x4x326xf32> to vector<4x326xf32>
    %cst = arith.constant 0.000000e+00 : f32
    %4 = vector.broadcast %cst : f32 to vector<4x326xf32>
    %5 = arith.maximumf %3, %4 : vector<4x326xf32>
    %6 = vector.extract_strided_slice %5 {offsets = [0, 0], sizes = [4, 288], strides = [1, 1]} : vector<4x326xf32> to vector<4x288xf32>
    %7 = vector.extract_strided_slice %5 {offsets = [0, 1], sizes = [4, 288], strides = [1, 1]} : vector<4x326xf32> to vector<4x288xf32>
    %8 = vector.extract_strided_slice %5 {offsets = [0, 2], sizes = [4, 288], strides = [1, 1]} : vector<4x326xf32> to vector<4x288xf32>
    %9 = vector.extract_strided_slice %5 {offsets = [0, 18], sizes = [4, 288], strides = [1, 1]} : vector<4x326xf32> to vector<4x288xf32>
    %10 = vector.extract_strided_slice %5 {offsets = [0, 19], sizes = [4, 288], strides = [1, 1]} : vector<4x326xf32> to vector<4x288xf32>
    %11 = vector.extract_strided_slice %5 {offsets = [0, 20], sizes = [4, 288], strides = [1, 1]} : vector<4x326xf32> to vector<4x288xf32>
    %12 = vector.extract_strided_slice %5 {offsets = [0, 36], sizes = [4, 288], strides = [1, 1]} : vector<4x326xf32> to vector<4x288xf32>
    %13 = vector.extract_strided_slice %5 {offsets = [0, 37], sizes = [4, 288], strides = [1, 1]} : vector<4x326xf32> to vector<4x288xf32>
    %14 = vector.extract_strided_slice %5 {offsets = [0, 38], sizes = [4, 288], strides = [1, 1]} : vector<4x326xf32> to vector<4x288xf32>
    %c0_7 = arith.constant 0 : index
    %c0_8 = arith.constant 0 : index
    %15 = vector.load %arg4[%c0_7, %c0_8] : memref<8x1xf32, #tpu.memory_space<vmem>>, vector<8x1xf32>
    %cst_9 = arith.constant 0.000000e+00 : f32
    %16 = vector.broadcast %cst_9 : f32 to vector<8x288xf32>
    %c0_10 = arith.constant 0 : index
    %c0_11 = arith.constant 0 : index
    %c0_12 = arith.constant 0 : index
    %17 = vector.load %arg3[%c0_10, %c0_11, %c0_12] : memref<16x8x4xf32, #tpu.memory_space<vmem>>, vector<1x8x4xf32>
    %18 = vector.shape_cast %17 : vector<1x8x4xf32> to vector<8x4xf32>
    %cst_13 = arith.constant dense<0.000000e+00> : vector<8x288xf32>
    %19 = tpu.matmul %18, %6, %cst_13 {dimension_numbers = #tpu.dot_dimension_numbers<[1], [0], [0], [1], [0, 0, 1, 1], [], []>} : vector<8x4xf32>, vector<4x288xf32>, vector<8x288xf32> -> vector<8x288xf32>
    %20 = arith.addf %16, %19 : vector<8x288xf32>
    %c1 = arith.constant 1 : index
    %c0_14 = arith.constant 0 : index
    %c0_15 = arith.constant 0 : index
    %21 = vector.load %arg3[%c1, %c0_14, %c0_15] : memref<16x8x4xf32, #tpu.memory_space<vmem>>, vector<1x8x4xf32>
    %22 = vector.shape_cast %21 : vector<1x8x4xf32> to vector<8x4xf32>
    %cst_16 = arith.constant dense<0.000000e+00> : vector<8x288xf32>
    %23 = tpu.matmul %22, %7, %cst_16 {dimension_numbers = #tpu.dot_dimension_numbers<[1], [0], [0], [1], [0, 0, 1, 1], [], []>} : vector<8x4xf32>, vector<4x288xf32>, vector<8x288xf32> -> vector<8x288xf32>
    %24 = arith.addf %20, %23 : vector<8x288xf32>
    %c2 = arith.constant 2 : index
    %c0_17 = arith.constant 0 : index
    %c0_18 = arith.constant 0 : index
    %25 = vector.load %arg3[%c2, %c0_17, %c0_18] : memref<16x8x4xf32, #tpu.memory_space<vmem>>, vector<1x8x4xf32>
    %26 = vector.shape_cast %25 : vector<1x8x4xf32> to vector<8x4xf32>
    %cst_19 = arith.constant dense<0.000000e+00> : vector<8x288xf32>
    %27 = tpu.matmul %26, %9, %cst_19 {dimension_numbers = #tpu.dot_dimension_numbers<[1], [0], [0], [1], [0, 0, 1, 1], [], []>} : vector<8x4xf32>, vector<4x288xf32>, vector<8x288xf32> -> vector<8x288xf32>
    %28 = arith.addf %24, %27 : vector<8x288xf32>
    %c3 = arith.constant 3 : index
    %c0_20 = arith.constant 0 : index
    %c0_21 = arith.constant 0 : index
    %29 = vector.load %arg3[%c3, %c0_20, %c0_21] : memref<16x8x4xf32, #tpu.memory_space<vmem>>, vector<1x8x4xf32>
    %30 = vector.shape_cast %29 : vector<1x8x4xf32> to vector<8x4xf32>
    %cst_22 = arith.constant dense<0.000000e+00> : vector<8x288xf32>
    %31 = tpu.matmul %30, %10, %cst_22 {dimension_numbers = #tpu.dot_dimension_numbers<[1], [0], [0], [1], [0, 0, 1, 1], [], []>} : vector<8x4xf32>, vector<4x288xf32>, vector<8x288xf32> -> vector<8x288xf32>
    %32 = arith.addf %28, %31 : vector<8x288xf32>
    %33 = vector.broadcast %15 : vector<8x1xf32> to vector<8x288xf32>
    %34 = arith.addf %32, %33 : vector<8x288xf32>
    %cst_23 = arith.constant 0.000000e+00 : f32
    %35 = vector.broadcast %cst_23 : f32 to vector<8x288xf32>
    %c4 = arith.constant 4 : index
    %c0_24 = arith.constant 0 : index
    %c0_25 = arith.constant 0 : index
    %36 = vector.load %arg3[%c4, %c0_24, %c0_25] : memref<16x8x4xf32, #tpu.memory_space<vmem>>, vector<1x8x4xf32>
    %37 = vector.shape_cast %36 : vector<1x8x4xf32> to vector<8x4xf32>
    %cst_26 = arith.constant dense<0.000000e+00> : vector<8x288xf32>
    %38 = tpu.matmul %37, %7, %cst_26 {dimension_numbers = #tpu.dot_dimension_numbers<[1], [0], [0], [1], [0, 0, 1, 1], [], []>} : vector<8x4xf32>, vector<4x288xf32>, vector<8x288xf32> -> vector<8x288xf32>
    %39 = arith.addf %35, %38 : vector<8x288xf32>
    %c5 = arith.constant 5 : index
    %c0_27 = arith.constant 0 : index
    %c0_28 = arith.constant 0 : index
    %40 = vector.load %arg3[%c5, %c0_27, %c0_28] : memref<16x8x4xf32, #tpu.memory_space<vmem>>, vector<1x8x4xf32>
    %41 = vector.shape_cast %40 : vector<1x8x4xf32> to vector<8x4xf32>
    %cst_29 = arith.constant dense<0.000000e+00> : vector<8x288xf32>
    %42 = tpu.matmul %41, %8, %cst_29 {dimension_numbers = #tpu.dot_dimension_numbers<[1], [0], [0], [1], [0, 0, 1, 1], [], []>} : vector<8x4xf32>, vector<4x288xf32>, vector<8x288xf32> -> vector<8x288xf32>
    %43 = arith.addf %39, %42 : vector<8x288xf32>
    %c6 = arith.constant 6 : index
    %c0_30 = arith.constant 0 : index
    %c0_31 = arith.constant 0 : index
    %44 = vector.load %arg3[%c6, %c0_30, %c0_31] : memref<16x8x4xf32, #tpu.memory_space<vmem>>, vector<1x8x4xf32>
    %45 = vector.shape_cast %44 : vector<1x8x4xf32> to vector<8x4xf32>
    %cst_32 = arith.constant dense<0.000000e+00> : vector<8x288xf32>
    %46 = tpu.matmul %45, %10, %cst_32 {dimension_numbers = #tpu.dot_dimension_numbers<[1], [0], [0], [1], [0, 0, 1, 1], [], []>} : vector<8x4xf32>, vector<4x288xf32>, vector<8x288xf32> -> vector<8x288xf32>
    %47 = arith.addf %43, %46 : vector<8x288xf32>
    %c7 = arith.constant 7 : index
    %c0_33 = arith.constant 0 : index
    %c0_34 = arith.constant 0 : index
    %48 = vector.load %arg3[%c7, %c0_33, %c0_34] : memref<16x8x4xf32, #tpu.memory_space<vmem>>, vector<1x8x4xf32>
    %49 = vector.shape_cast %48 : vector<1x8x4xf32> to vector<8x4xf32>
    %cst_35 = arith.constant dense<0.000000e+00> : vector<8x288xf32>
    %50 = tpu.matmul %49, %11, %cst_35 {dimension_numbers = #tpu.dot_dimension_numbers<[1], [0], [0], [1], [0, 0, 1, 1], [], []>} : vector<8x4xf32>, vector<4x288xf32>, vector<8x288xf32> -> vector<8x288xf32>
    %51 = arith.addf %47, %50 : vector<8x288xf32>
    %52 = vector.broadcast %15 : vector<8x1xf32> to vector<8x288xf32>
    %53 = arith.addf %51, %52 : vector<8x288xf32>
    %cst_36 = arith.constant 0.000000e+00 : f32
    %54 = vector.broadcast %cst_36 : f32 to vector<8x288xf32>
    %c8 = arith.constant 8 : index
    %c0_37 = arith.constant 0 : index
    %c0_38 = arith.constant 0 : index
    %55 = vector.load %arg3[%c8, %c0_37, %c0_38] : memref<16x8x4xf32, #tpu.memory_space<vmem>>, vector<1x8x4xf32>
    %56 = vector.shape_cast %55 : vector<1x8x4xf32> to vector<8x4xf32>
    %cst_39 = arith.constant dense<0.000000e+00> : vector<8x288xf32>
    %57 = tpu.matmul %56, %9, %cst_39 {dimension_numbers = #tpu.dot_dimension_numbers<[1], [0], [0], [1], [0, 0, 1, 1], [], []>} : vector<8x4xf32>, vector<4x288xf32>, vector<8x288xf32> -> vector<8x288xf32>
    %58 = arith.addf %54, %57 : vector<8x288xf32>
    %c9 = arith.constant 9 : index
    %c0_40 = arith.constant 0 : index
    %c0_41 = arith.constant 0 : index
    %59 = vector.load %arg3[%c9, %c0_40, %c0_41] : memref<16x8x4xf32, #tpu.memory_space<vmem>>, vector<1x8x4xf32>
    %60 = vector.shape_cast %59 : vector<1x8x4xf32> to vector<8x4xf32>
    %cst_42 = arith.constant dense<0.000000e+00> : vector<8x288xf32>
    %61 = tpu.matmul %60, %10, %cst_42 {dimension_numbers = #tpu.dot_dimension_numbers<[1], [0], [0], [1], [0, 0, 1, 1], [], []>} : vector<8x4xf32>, vector<4x288xf32>, vector<8x288xf32> -> vector<8x288xf32>
    %62 = arith.addf %58, %61 : vector<8x288xf32>
    %c10 = arith.constant 10 : index
    %c0_43 = arith.constant 0 : index
    %c0_44 = arith.constant 0 : index
    %63 = vector.load %arg3[%c10, %c0_43, %c0_44] : memref<16x8x4xf32, #tpu.memory_space<vmem>>, vector<1x8x4xf32>
    %64 = vector.shape_cast %63 : vector<1x8x4xf32> to vector<8x4xf32>
    %cst_45 = arith.constant dense<0.000000e+00> : vector<8x288xf32>
    %65 = tpu.matmul %64, %12, %cst_45 {dimension_numbers = #tpu.dot_dimension_numbers<[1], [0], [0], [1], [0, 0, 1, 1], [], []>} : vector<8x4xf32>, vector<4x288xf32>, vector<8x288xf32> -> vector<8x288xf32>
    %66 = arith.addf %62, %65 : vector<8x288xf32>
    %c11 = arith.constant 11 : index
    %c0_46 = arith.constant 0 : index
    %c0_47 = arith.constant 0 : index
    %67 = vector.load %arg3[%c11, %c0_46, %c0_47] : memref<16x8x4xf32, #tpu.memory_space<vmem>>, vector<1x8x4xf32>
    %68 = vector.shape_cast %67 : vector<1x8x4xf32> to vector<8x4xf32>
    %cst_48 = arith.constant dense<0.000000e+00> : vector<8x288xf32>
    %69 = tpu.matmul %68, %13, %cst_48 {dimension_numbers = #tpu.dot_dimension_numbers<[1], [0], [0], [1], [0, 0, 1, 1], [], []>} : vector<8x4xf32>, vector<4x288xf32>, vector<8x288xf32> -> vector<8x288xf32>
    %70 = arith.addf %66, %69 : vector<8x288xf32>
    %71 = vector.broadcast %15 : vector<8x1xf32> to vector<8x288xf32>
    %72 = arith.addf %70, %71 : vector<8x288xf32>
    %cst_49 = arith.constant 0.000000e+00 : f32
    %73 = vector.broadcast %cst_49 : f32 to vector<8x288xf32>
    %c12 = arith.constant 12 : index
    %c0_50 = arith.constant 0 : index
    %c0_51 = arith.constant 0 : index
    %74 = vector.load %arg3[%c12, %c0_50, %c0_51] : memref<16x8x4xf32, #tpu.memory_space<vmem>>, vector<1x8x4xf32>
    %75 = vector.shape_cast %74 : vector<1x8x4xf32> to vector<8x4xf32>
    %cst_52 = arith.constant dense<0.000000e+00> : vector<8x288xf32>
    %76 = tpu.matmul %75, %10, %cst_52 {dimension_numbers = #tpu.dot_dimension_numbers<[1], [0], [0], [1], [0, 0, 1, 1], [], []>} : vector<8x4xf32>, vector<4x288xf32>, vector<8x288xf32> -> vector<8x288xf32>
    %77 = arith.addf %73, %76 : vector<8x288xf32>
    %c13 = arith.constant 13 : index
    %c0_53 = arith.constant 0 : index
    %c0_54 = arith.constant 0 : index
    %78 = vector.load %arg3[%c13, %c0_53, %c0_54] : memref<16x8x4xf32, #tpu.memory_space<vmem>>, vector<1x8x4xf32>
    %79 = vector.shape_cast %78 : vector<1x8x4xf32> to vector<8x4xf32>
    %cst_55 = arith.constant dense<0.000000e+00> : vector<8x288xf32>
    %80 = tpu.matmul %79, %11, %cst_55 {dimension_numbers = #tpu.dot_dimension_numbers<[1], [0], [0], [1], [0, 0, 1, 1], [], []>} : vector<8x4xf32>, vector<4x288xf32>, vector<8x288xf32> -> vector<8x288xf32>
    %81 = arith.addf %77, %80 : vector<8x288xf32>
    %c14 = arith.constant 14 : index
    %c0_56 = arith.constant 0 : index
    %c0_57 = arith.constant 0 : index
    %82 = vector.load %arg3[%c14, %c0_56, %c0_57] : memref<16x8x4xf32, #tpu.memory_space<vmem>>, vector<1x8x4xf32>
    %83 = vector.shape_cast %82 : vector<1x8x4xf32> to vector<8x4xf32>
    %cst_58 = arith.constant dense<0.000000e+00> : vector<8x288xf32>
    %84 = tpu.matmul %83, %13, %cst_58 {dimension_numbers = #tpu.dot_dimension_numbers<[1], [0], [0], [1], [0, 0, 1, 1], [], []>} : vector<8x4xf32>, vector<4x288xf32>, vector<8x288xf32> -> vector<8x288xf32>
    %85 = arith.addf %81, %84 : vector<8x288xf32>
    %c15 = arith.constant 15 : index
    %c0_59 = arith.constant 0 : index
    %c0_60 = arith.constant 0 : index
    %86 = vector.load %arg3[%c15, %c0_59, %c0_60] : memref<16x8x4xf32, #tpu.memory_space<vmem>>, vector<1x8x4xf32>
    %87 = vector.shape_cast %86 : vector<1x8x4xf32> to vector<8x4xf32>
    %cst_61 = arith.constant dense<0.000000e+00> : vector<8x288xf32>
    %88 = tpu.matmul %87, %14, %cst_61 {dimension_numbers = #tpu.dot_dimension_numbers<[1], [0], [0], [1], [0, 0, 1, 1], [], []>} : vector<8x4xf32>, vector<4x288xf32>, vector<8x288xf32> -> vector<8x288xf32>
    %89 = arith.addf %85, %88 : vector<8x288xf32>
    %90 = vector.broadcast %15 : vector<8x1xf32> to vector<8x288xf32>
    %91 = arith.addf %89, %90 : vector<8x288xf32>
    %92 = vector.broadcast %0 : vector<8x1xf32> to vector<8x288xf32>
    %93 = arith.mulf %34, %92 : vector<8x288xf32>
    %94 = vector.broadcast %1 : vector<8x1xf32> to vector<8x288xf32>
    %95 = arith.addf %93, %94 : vector<8x288xf32>
    %c0_62 = arith.constant 0 : index
    %c0_63 = arith.constant 0 : index
    %c0_64 = arith.constant 0 : index
    %c0_65 = arith.constant 0 : index
    %c0_66 = arith.constant 0 : index
    %96 = vector.load %arg7[%c0_62, %c0_63, %c0_64, %c0_65, %c0_66] : memref<1x1x4x8x288xf32, #tpu.memory_space<vmem>>, vector<1x1x1x8x288xf32>
    %97 = vector.shape_cast %96 : vector<1x1x1x8x288xf32> to vector<8x288xf32>
    %98 = vector.shape_cast %95 : vector<8x288xf32> to vector<1x1x1x8x288xf32>
    tpu.vector_store %arg7[%c0_62, %c0_63, %c0_64, %c0_65, %c0_66], %98 {strides = array<i32>} : memref<1x1x4x8x288xf32, #tpu.memory_space<vmem>>, vector<1x1x1x8x288xf32>,
    %99 = vector.broadcast %0 : vector<8x1xf32> to vector<8x288xf32>
    %100 = arith.mulf %53, %99 : vector<8x288xf32>
    %101 = vector.broadcast %1 : vector<8x1xf32> to vector<8x288xf32>
    %102 = arith.addf %100, %101 : vector<8x288xf32>
    %c0_67 = arith.constant 0 : index
    %c0_68 = arith.constant 0 : index
    %c1_69 = arith.constant 1 : index
    %c0_70 = arith.constant 0 : index
    %c0_71 = arith.constant 0 : index
    %103 = vector.load %arg7[%c0_67, %c0_68, %c1_69, %c0_70, %c0_71] : memref<1x1x4x8x288xf32, #tpu.memory_space<vmem>>, vector<1x1x1x8x288xf32>
    %104 = vector.shape_cast %103 : vector<1x1x1x8x288xf32> to vector<8x288xf32>
    %105 = vector.shape_cast %102 : vector<8x288xf32> to vector<1x1x1x8x288xf32>
    tpu.vector_store %arg7[%c0_67, %c0_68, %c1_69, %c0_70, %c0_71], %105 {strides = array<i32>} : memref<1x1x4x8x288xf32, #tpu.memory_space<vmem>>, vector<1x1x1x8x288xf32>,
    %106 = vector.broadcast %0 : vector<8x1xf32> to vector<8x288xf32>
    %107 = arith.mulf %72, %106 : vector<8x288xf32>
    %108 = vector.broadcast %1 : vector<8x1xf32> to vector<8x288xf32>
    %109 = arith.addf %107, %108 : vector<8x288xf32>
    %c0_72 = arith.constant 0 : index
    %c0_73 = arith.constant 0 : index
    %c2_74 = arith.constant 2 : index
    %c0_75 = arith.constant 0 : index
    %c0_76 = arith.constant 0 : index
    %110 = vector.load %arg7[%c0_72, %c0_73, %c2_74, %c0_75, %c0_76] : memref<1x1x4x8x288xf32, #tpu.memory_space<vmem>>, vector<1x1x1x8x288xf32>
    %111 = vector.shape_cast %110 : vector<1x1x1x8x288xf32> to vector<8x288xf32>
    %112 = vector.shape_cast %109 : vector<8x288xf32> to vector<1x1x1x8x288xf32>
    tpu.vector_store %arg7[%c0_72, %c0_73, %c2_74, %c0_75, %c0_76], %112 {strides = array<i32>} : memref<1x1x4x8x288xf32, #tpu.memory_space<vmem>>, vector<1x1x1x8x288xf32>,
    %113 = vector.broadcast %0 : vector<8x1xf32> to vector<8x288xf32>
    %114 = arith.mulf %91, %113 : vector<8x288xf32>
    %115 = vector.broadcast %1 : vector<8x1xf32> to vector<8x288xf32>
    %116 = arith.addf %114, %115 : vector<8x288xf32>
    %c0_77 = arith.constant 0 : index
    %c0_78 = arith.constant 0 : index
    %c3_79 = arith.constant 3 : index
    %c0_80 = arith.constant 0 : index
    %c0_81 = arith.constant 0 : index
    %117 = vector.load %arg7[%c0_77, %c0_78, %c3_79, %c0_80, %c0_81] : memref<1x1x4x8x288xf32, #tpu.memory_space<vmem>>, vector<1x1x1x8x288xf32>
    %118 = vector.shape_cast %117 : vector<1x1x1x8x288xf32> to vector<8x288xf32>
    %119 = vector.shape_cast %116 : vector<8x288xf32> to vector<1x1x1x8x288xf32>
    tpu.vector_store %arg7[%c0_77, %c0_78, %c3_79, %c0_80, %c0_81], %119 {strides = array<i32>} : memref<1x1x4x8x288xf32, #tpu.memory_space<vmem>>, vector<1x1x1x8x288xf32>,
    return
  }
  func.func @transform_0(%arg0: i32, %arg1: i32) -> (i32, i32, i32, i32) {
    %c0_i32 = arith.constant 0 : i32
    %c0_i32_0 = arith.constant 0 : i32
    %c0_i32_1 = arith.constant 0 : i32
    return %arg0, %arg1, %c0_i32, %c0_i32_0 : i32, i32, i32, i32
  }
  func.func @transform_1(%arg0: i32, %arg1: i32) -> (i32, i32, i32) {
    %c0_i32 = arith.constant 0 : i32
    %c0_i32_0 = arith.constant 0 : i32
    %c0_i32_1 = arith.constant 0 : i32
    %c0_i32_2 = arith.constant 0 : i32
    return %c0_i32, %c0_i32_0, %c0_i32_1 : i32, i32, i32
  }
  func.func @transform_2(%arg0: i32, %arg1: i32) -> (i32, i32) {
    %c0_i32 = arith.constant 0 : i32
    %c0_i32_0 = arith.constant 0 : i32
    %c0_i32_1 = arith.constant 0 : i32
    return %c0_i32, %c0_i32_0 : i32, i32
  }
  func.func @transform_3(%arg0: i32, %arg1: i32) -> (i32, i32) {
    %c0_i32 = arith.constant 0 : i32
    %c0_i32_0 = arith.constant 0 : i32
    %c0_i32_1 = arith.constant 0 : i32
    return %c0_i32, %c0_i32_0 : i32, i32
  }
  func.func @transform_4(%arg0: i32, %arg1: i32) -> (i32, i32) {
    %c0_i32 = arith.constant 0 : i32
    %c0_i32_0 = arith.constant 0 : i32
    %c0_i32_1 = arith.constant 0 : i32
    return %c0_i32, %c0_i32_0 : i32, i32
  }
  func.func @transform_5(%arg0: i32, %arg1: i32) -> (i32, i32, i32, i32, i32) {
    %c0_i32 = arith.constant 0 : i32
    %c0_i32_0 = arith.constant 0 : i32
    %c0_i32_1 = arith.constant 0 : i32
    %c0_i32_2 = arith.constant 0 : i32
    return %arg0, %arg1, %c0_i32, %c0_i32_0, %c0_i32_1 : i32, i32, i32, i32, i32
  }
}

</mosaic_0001>

<bundles_post_ra>
// kernel: upsample_forward.2
= control target key start
LH: loop header
LB: loop body
LE: loop exit
PB: predicated region body
PF: predicated region fallthrough
CT: control target
= control target key end

     0   :  { %s3241_s15 = smov 0   ;;  %s3243_s16 = smov 0   ;;  %s3641_s0 = inlined_call_operand.vmem [shape: f32[2,1,4,326], index: 0, kind: input, shape index: {}]   ;;  %s3642_s1 = inlined_call_operand.vmem [shape: f32[16,8,4], index: 1, kind: input, shape index: {}]   ;;  %s3643_s2 = inlined_call_operand.vmem [shape: f32[8,1], index: 2, kind: input, shape index: {}]   ;;  %s3644_s3 = inlined_call_operand.vmem [shape: f32[8,1], index: 3, kind: output, shape index: {0}]   ;;  %s3645_s4 = inlined_call_operand.vmem [shape: f32[8,1], index: 4, kind: output, shape index: {1}]  }
   0x1   :  { %s3245_s17 = smov 0  }
   0x2 LB: > { %s27_s18 = sadd.s32 1, %s3198_s16  ;;  %p2923_p0 = scmp.ge.s32.totalorder %s3202_s17, 1  ;;  %s3202_s17 = sphi %s3245_s17, %s15_s17   ;;  %s3198_s16 = sphi %s3243_s16, %s3659_s16   ;;  %s3194_s15 = sphi %s3241_s15, %s3658_s15  }
   0x3   : > { %p29_p1 = scmp.ge.s32.totalorder %s27_s18, 2  ;;  %p173_p2 = scmp.lt.s32.totalorder %s3202_s17, 3 }
   0x5   : > { %s3661_s18 = smov (%p29_p1, %s27_s18), 0  ;;  %p174_p3 = pnand %p2923_p0, %p173_p2 }
   0x6   : > { %p198_p4 = scmp.lt.s32.totalorder (!%p174_p3), %s3194_s15, 1  ;;  %p207_p5 = scmp.eq.s32.totalorder (!%p174_p3), %s3194_s15, 0 }
   0x7   : > { %177 = sbr.rel (%p174_p3) target bundleno = 552 (0x228), region = 32 }
   0xc   : > { %s3663_s15 = smov (!%p198_p4, %s3194_s15), 1  ;;  %212 = sbr.rel (!%p207_p5) target bundleno = 17 (0x11), region = 36  ;;  %vm213_vm0 = vcmask (%p207_p5), 7168   ;;  %v3204_v0 = vmov (%p207_p5), 0.0  }
   0xd   : > { %s3136_s19 = smul.u32 12, %s3663_s15  ;;  %214 = vst.msk [vmem:[%s3644_s3] sm:$0xff] (%p207_p5), %vm213_vm0, %v3204_v0  ;;  %215 = vst.msk [vmem:[%s3645_s4] sm:$0xff] (%p207_p5), %vm213_vm0, %v3204_v0 }
   0xf   : > { %s206_s22 = scalar_lea.vmem %s3641_s0, %s3136_s19 }
  0x11 PF: > { %v272_v1 = vld [vmem:[%s206_s22 + $0x8] sm:$0xf]  ;;  %v271_v2 = vld [vmem:[%s206_s22] sm:$0xff]  ;;  %v3205_v5 = vmov 0.0   ;;  %vm3206_vm1 = vmmov 0   ;;  %s3207_s27 = smov 127  }
  0x12   : > { %v274_v3 = vmax.f32 %v272_v1, 0.0  ;;  %v3268_v4 = vmax.f32 %v271_v2, 0.0  ;;  %3056 = vmatprep.subr.mxu1 %v3205_v5  ;;  %366 = vmatprep.mubr.f32.mxu0 %v3205_v5  ;;  %s3208_s28 = smov 110   ;;  %s3209_s29 = smov 109   ;;  %v275_v7 = vld [vmem:[%s3643_s2] sm:$0xff]  ;;  %v3215_v8 = vmov 0   ;;  %v216_v1 = vlaneseq }
  0x13   : > { %3058 = vmatprep.mubr.msk.f32.mxu1 %vm3206_vm1, %v3205_v5  ;;  %s3210_s30 = smov 126   ;;  %s3211_s5 = smov 108   ;;  %3179 = vset.pattern.permute.xlu0 %v3215_v8  ;;  %vm295_vm2 = vcmask 1043456   ;;  %v2926_v9 = vld [vmem:[%s3642_s1 + $0x8] sm:$0xff]  ;;  %vm291_vm3 = vcmask 31744   ;;  %vm288_vm4 = vcmask 1039360  }
  0x14   : > { %286 = vrot.lane.b32.xlu0 %v274_v3, %s3207_s27  ;;  %282 = vrot.lane.b32.xlu1 %v3268_v4, %s3207_s27  ;;  %v281_v6 = vcombine.high %v3268_v4, %v3268_v4  ;;  %s3212_s6 = smov 92   ;;  %s3213_s7 = smov 91   ;;  %v276_v12 = vld [vmem:[%s3642_s1] sm:$0xff]  ;;  %vm601_vm5 = vcmask 900096   ;;  %v2937_v19 = vld [vmem:[%s3642_s1 + $0x10] sm:$0xff]  ;;  %vm765_vm6 = vcmask 891904  }
  0x15   : > { %s3214_s8 = smov 90   ;;  %v2943_v24 = vld [vmem:[%s3642_s1 + $0x18] sm:$0xff]  ;;  %vm939_vm7 = vcmask 1031168   ;;  %v2950_v29 = vld [vmem:[%s3642_s1 + $0x28] sm:$0xff]  ;;  %v2949_v35 = vld [vmem:[%s3642_s1 + $0x20] sm:$0xff]  ;;  %vm1393_vm8 = vcmask 883712  }
  0x16   : > { %v2961_v38 = vld [vmem:[%s3642_s1 + $0x30] sm:$0xff]  ;;  %v2967_v42 = vld [vmem:[%s3642_s1 + $0x38] sm:$0xff]  ;;  %v2974_v45 = vld [vmem:[%s3642_s1 + $0x48] sm:$0xff]  ;;  %vm1852_vm9 = vcmask 752640   ;;  %vm2016_vm10 = vcmask 744448   ;;  %vm2624_vm11 = vcmask 736256  }
  0x17   : > { %v2973_v48 = vld [vmem:[%s3642_s1 + $0x40] sm:$0xff]  ;;  %v2985_v51 = vld [vmem:[%s3642_s1 + $0x50] sm:$0xff]  ;;  %v2991_v55 = vld [vmem:[%s3642_s1 + $0x58] sm:$0xff]  ;;  %v217_v2 = vand.u32 127, %v216_v1 }
  0x18   : > { %597 = vrot.lane.b32.xlu1 %v281_v6, %s3208_s28  ;;  %284 = vrot.lane.b32.xlu0 %v281_v6, %s3207_s27  ;;  %v2998_v56 = vld [vmem:[%s3642_s1 + $0x68] sm:$0xff]  ;;  %v2997_v58 = vld [vmem:[%s3642_s1 + $0x60] sm:$0xff] }
  0x19   : > { %v3009_v62 = vld [vmem:[%s3642_s1 + $0x70] sm:$0xff]  ;;  %v3015_v0 = vld [vmem:[%s3642_s1 + $0x78] sm:$0xff] }
  0x1c   : > { %595 = vrot.lane.b32.xlu1 %v3268_v4, %s3208_s28  ;;  %599 = vrot.lane.b32.xlu0 %v274_v3, %s3208_s28 }
  0x20   : > { %763 = vrot.lane.b32.xlu1 %v274_v3, %s3209_s29  ;;  %761 = vrot.lane.b32.xlu0 %v281_v6, %s3209_s29 }
  0x24   : > { %935 = vrot.lane.b32.xlu1 %v281_v6, %s3210_s30  ;;  %759 = vrot.lane.b32.xlu0 %v3268_v4, %s3209_s29 }
  0x28   : > { %933 = vrot.lane.b32.xlu1 %v3268_v4, %s3210_s30  ;;  %937 = vrot.lane.b32.xlu0 %v274_v3, %s3210_s30 }
  0x2c   : > { %1389 = vrot.lane.b32.xlu0 %v281_v6, %s3211_s5  ;;  %1391 = vrot.lane.b32.xlu1 %v274_v3, %s3211_s5 }
  0x30   : > { %1387 = vrot.lane.b32.xlu0 %v3268_v4, %s3211_s5  ;;  %1848 = vrot.lane.b32.xlu1 %v281_v6, %s3212_s6 }
  0x34   : > { %1850 = vrot.lane.b32.xlu0 %v274_v3, %s3212_s6  ;;  %1846 = vrot.lane.b32.xlu1 %v3268_v4, %s3212_s6 }
  0x38   : > { %2012 = vrot.lane.b32.xlu0 %v281_v6, %s3213_s7  ;;  %2014 = vrot.lane.b32.xlu1 %v274_v3, %s3213_s7 }
  0x3c   : > { %2010 = vrot.lane.b32.xlu0 %v3268_v4, %s3213_s7  ;;  %2620 = vrot.lane.b32.xlu1 %v281_v6, %s3214_s8 }
  0x40   : > { %2618 = vrot.lane.b32.xlu1 %v3268_v4, %s3214_s8  ;;  %2622 = vrot.lane.b32.xlu0 %v274_v3, %s3214_s8 }
  0x44   : > { %923 = vperm.xlu0 %3179, %v275_v7  }
  0x86   : > { %v3290_v10 = vpop.permute.xlu0 %286  ;;  %v283_v11 = vpop.permute.xlu1 %282 }
  0x87   : > { %3057 = vmatpush3.msk.msra.mxu1 %vm295_vm2, %v3290_v10 }
  0x88   : > { %3059 = vmatmul.mubr.msk.f32.vlgmr.msra.gmra.mxu1 %vm291_vm3, %v2926_v9  ;;  %3061 = vmatprep.subr.mxu1 %v3205_v5 }
  0x89   : > { %3062 = vmatpush3.msk.msra.mxu1 %vm295_vm2, %v274_v3  ;;  %3063 = vmatprep.mubr.msk.f32.mxu1 %vm3206_vm1, %v3205_v5  ;;  %v219_v3 = vadd.s32 256, %v217_v2 }
  0x8a   : > { %v598_v13 = vpop.permute.xlu1 %597  ;;  %v285_v14 = vpop.permute.xlu0 %284  ;;  %3066 = vmatprep.subr.mxu1 %v3205_v5 }
  0x8b   : > { %v290_v15 = vsel %vm288_vm4, %v285_v14, %v3290_v10  ;;  %v289_v16 = vsel %vm288_vm4, %v283_v11, %v285_v14 }
  0x8c   : > { %2927 = vmatprep.subr.msk.mxu0 %vm295_vm2, %v290_v15  ;;  %3064 = vmatmul.mubr.msk.f32.vlgmr.msra.gmra.mxu1 %vm291_vm3, %v276_v12 }
  0x8d   : > { %2928 = vmatpush1.msk.msra.mxu0 %vm295_vm2, %v289_v16  ;;  %3068 = vmatprep.mubr.msk.f32.mxu1 %vm3206_vm1, %v3205_v5 }
  0x8e   : > { %v596_v17 = vpop.permute.xlu1 %595  ;;  %2929 = vmatmul.mubr.msk.f32.vlgmr.msra.gmra.mxu0 %vm291_vm3, %v2926_v9  ;;  %2932 = vmatprep.subr.msk.mxu0 %vm295_vm2, %v281_v6  ;;  %v3311_v18 = vpop.permute.xlu0 %599  ;;  %v3532_v6 = vmul.u32.u64.low 3817748708, %v219_v3  ;;  %v3533_v7 = vmul.u32.u64.high 3817748708, %v219_v3, %v3532_v6  ;;  %v3535_v8 = vmul.u32.u64.low 3817748708, %v217_v2  ;;  %v3536_v9 = vmul.u32.u64.high 3817748708, %v217_v2, %v3535_v8 }
  0x8f   : > { %2933 = vmatpush1.msk.msra.mxu0 %vm295_vm2, %v3268_v4  ;;  %3067 = vmatpush3.msk.msra.mxu1 %vm295_vm2, %v3311_v18  ;;  %v3322_v20 = vsel %vm601_vm5, %v598_v13, %v3311_v18  ;;  %v3330_v21 = vsel %vm601_vm5, %v596_v17, %v598_v13  ;;  %v218_v4 = vadd.s32 128, %v217_v2 }
  0x90   : > { %2938 = vmatprep.subr.msk.mxu0 %vm295_vm2, %v3322_v20  ;;  %516 = vmatprep.mubr.f32.mxu0 %v3205_v5 }
  0x91   : > { %3071 = vmatprep.subr.mxu1 %v3205_v5  ;;  %3069 = vmatmul.mubr.msk.f32.vlgmr.msra.gmra.mxu1 %vm291_vm3, %v2937_v19 }
  0x92   : > { %v3332_v22 = vpop.permute.xlu1 %763  ;;  %2934 = vmatmul.mubr.msk.f32.vlgmr.msra.gmra.mxu0 %vm291_vm3, %v276_v12  ;;  %v762_v23 = vpop.permute.xlu0 %761  ;;  %3073 = vmatprep.mubr.msk.f32.mxu1 %vm3206_vm1, %v3205_v5  ;;  %v248_v12 = vshrl.u32 %v3533_v7, 4 }
  0x93   : > { %2939 = vmatpush1.msk.msra.mxu0 %vm295_vm2, %v3330_v21  ;;  %v3344_v25 = vsel %vm765_vm6, %v762_v23, %v3332_v22  ;;  %3072 = vmatpush3.msk.msra.mxu1 %vm295_vm2, %v3332_v22 }
  0x94   : > { %2944 = vmatprep.subr.msk.mxu0 %vm295_vm2, %v3344_v25  ;;  %677 = vmatprep.mubr.f32.mxu0 %v3205_v5 }
  0x95   : > { %3074 = vmatmul.mubr.msk.f32.vlgmr.msra.gmra.mxu1 %vm291_vm3, %v2943_v24  ;;  %3076 = vmatprep.subr.mxu1 %v3205_v5 }
  0x96   : > { %v936_v26 = vpop.permute.xlu1 %935  ;;  %2940 = vmatmul.mubr.msk.f32.vlgmr.msra.gmra.mxu0 %vm291_vm3, %v2937_v19  ;;  %v760_v27 = vpop.permute.xlu0 %759  ;;  %3078 = vmatprep.mubr.msk.f32.mxu1 %vm3206_vm1, %v3205_v5 }
  0x97   : > { %v3357_v28 = vsel %vm765_vm6, %v760_v27, %v762_v23  ;;  %841 = vmatprep.mubr.f32.mxu0 %v3205_v5 }
  0x98   : > { %2945 = vmatpush1.msk.msra.mxu0 %vm295_vm2, %v3357_v28 }
  0x9a   : > { %v934_v30 = vpop.permute.xlu1 %933  ;;  %2946 = vmatmul.mubr.msk.f32.vlgmr.msra.gmra.mxu0 %vm291_vm3, %v2943_v24  ;;  %v938_v31 = vpop.permute.xlu0 %937 }
  0x9b   : > { %v940_v32 = vsel %vm939_vm7, %v934_v30, %v936_v26  ;;  %v941_v33 = vsel %vm939_vm7, %v936_v26, %v938_v31  ;;  %3077 = vmatpush3.msk.msra.mxu1 %vm295_vm2, %v938_v31  ;;  %1015 = vmatprep.mubr.f32.mxu0 %v3205_v5 }
  0x9c   : > { %2951 = vmatprep.subr.msk.mxu0 %vm295_vm2, %v941_v33  ;;  %3079 = vmatmul.mubr.msk.f32.vlgmr.msra.gmra.mxu1 %vm291_vm3, %v2950_v29 }
  0x9d   : > { %3081 = vmatprep.subr.mxu1 %v3205_v5  ;;  %2952 = vmatpush1.msk.msra.mxu0 %vm295_vm2, %v940_v32 }
  0x9e   : > { %3082 = vmatpush3.msk.msra.mxu1 %vm295_vm2, %v3290_v10  ;;  %2953 = vmatmul.mubr.msk.f32.vlgmr.msra.gmra.mxu0 %vm291_vm3, %v2950_v29  ;;  %v1390_v34 = vpop.permute.xlu0 %1389  ;;  %v3381_v36 = vpop.permute.xlu1 %1391  ;;  %v3538_v10 = vmul.u32.u64.low 3817748708, %v218_v4  ;;  %v3539_v11 = vmul.u32.u64.high 3817748708, %v218_v4, %v3538_v10 }
  0x9f   : > { %2956 = vmatprep.subr.msk.mxu0 %vm295_vm2, %v290_v15  ;;  %3083 = vmatprep.mubr.msk.f32.mxu1 %vm3206_vm1, %v3205_v5  ;;  %v3395_v39 = vsel %vm1393_vm8, %v1390_v34, %v3381_v36 }
  0xa0   : > { %2957 = vmatpush1.msk.msra.mxu0 %vm295_vm2, %v289_v16  ;;  %3086 = vmatprep.subr.mxu1 %v3205_v5  ;;  %v237_v14 = vshrl.u32 %v3539_v11, 4  ;;  %v249_v16 = vmul.u32 18, %v248_v12 }
  0xa1   : > { %3084 = vmatmul.mubr.msk.f32.vlgmr.msra.gmra.mxu1 %vm291_vm3, %v2949_v35  ;;  %2962 = vmatprep.subr.msk.mxu0 %vm295_vm2, %v3344_v25 }
  0xa2   : > { %3087 = vmatpush3.msk.msra.mxu1 %vm295_vm2, %v3332_v22  ;;  %1159 = vmatprep.mubr.f32.mxu0 %v3205_v5  ;;  %v1388_v37 = vpop.permute.xlu0 %1387  ;;  %v1849_v40 = vpop.permute.xlu1 %1848  ;;  %v238_v19 = vmul.u32 18, %v237_v14  ;;  %v250_v23 = vsub.s32 %v219_v3, %v249_v16 }
  0xa3   : > { %2958 = vmatmul.mubr.msk.f32.vlgmr.msra.gmra.mxu0 %vm291_vm3, %v2949_v35  ;;  %3088 = vmatprep.mubr.msk.f32.mxu1 %vm3206_vm1, %v3205_v5  ;;  %v3403_v41 = vsel %vm1393_vm8, %v1388_v37, %v1390_v34  ;;  %vm2793_vm8 = vcmask 261120  }
  0xa4   : > { %2963 = vmatpush1.msk.msra.mxu0 %vm295_vm2, %v3357_v28  ;;  %1305 = vmatprep.mubr.f32.mxu0 %v3205_v5  ;;  %v239_v27 = vsub.s32 %v218_v4, %v238_v19  ;;  %vm255_vm12 = vcmp.ne.s32.totalorder %v250_v23, 0  ;;  %vm258_vm13 = vcmp.lt.s32.totalorder %v250_v23, 0  ;;  %v264_v32 = vadd.s32 18, %v250_v23 }
  0xa5   : > { %3089 = vmatmul.mubr.msk.f32.vlgmr.msra.gmra.mxu1 %vm291_vm3, %v2961_v38  ;;  %2968 = vmatprep.subr.msk.mxu0 %vm295_vm2, %v3395_v39 }
  0xa6   : > { %3091 = vmatprep.subr.mxu1 %v3205_v5  ;;  %3093 = vmatprep.mubr.msk.f32.mxu1 %vm3206_vm1, %v3205_v5  ;;  %v1851_v43 = vpop.permute.xlu0 %1850  ;;  %v1847_v44 = vpop.permute.xlu1 %1846  ;;  %vm254_vm0 = vcmp.ne.s32.totalorder %v239_v27, 0 }
  0xa7   : > { %2964 = vmatmul.mubr.msk.f32.vlgmr.msra.gmra.mxu0 %vm291_vm3, %v2961_v38  ;;  %3092 = vmatpush3.msk.msra.mxu1 %vm295_vm2, %v3381_v36  ;;  %v1854_v47 = vsel %vm1852_vm9, %v1849_v40, %v1851_v43  ;;  %v1853_v53 = vsel %vm1852_vm9, %v1847_v44, %v1849_v40  ;;  %vm2864_vm9 = vcmask 7168  }
  0xa8   : > { %2969 = vmatpush1.msk.msra.mxu0 %vm295_vm2, %v3403_v41  ;;  %3096 = vmatprep.subr.mxu1 %v3205_v5 }
  0xa9   : > { %2975 = vmatprep.subr.msk.mxu0 %vm295_vm2, %v3344_v25  ;;  %3094 = vmatmul.mubr.msk.f32.vlgmr.msra.gmra.mxu1 %vm291_vm3, %v2967_v42 }
  0xaa   : > { %3097 = vmatpush3.msk.msra.mxu1 %vm295_vm2, %v3332_v22  ;;  %1469 = vmatprep.mubr.f32.mxu0 %v3205_v5  ;;  %v2013_v46 = vpop.permute.xlu0 %2012  ;;  %v2015_v49 = vpop.permute.xlu1 %2014 }
  0xab   : > { %2970 = vmatmul.mubr.msk.f32.vlgmr.msra.gmra.mxu0 %vm291_vm3, %v2967_v42  ;;  %3098 = vmatprep.mubr.msk.f32.mxu1 %vm3206_vm1, %v3205_v5  ;;  %v2018_v52 = vsel %vm2016_vm10, %v2013_v46, %v2015_v49  ;;  %v263_v42 = vadd.s32 18, %v239_v27 }
  0xac   : > { %2976 = vmatpush1.msk.msra.mxu0 %vm295_vm2, %v3357_v28  ;;  %3101 = vmatprep.subr.mxu1 %v3205_v5 }
  0xad   : > { %2980 = vmatprep.subr.msk.mxu0 %vm295_vm2, %v3322_v20  ;;  %3099 = vmatmul.mubr.msk.f32.vlgmr.msra.gmra.mxu1 %vm291_vm3, %v2974_v45 }
  0xae   : > { %3102 = vmatpush3.msk.msra.mxu1 %vm295_vm2, %v3311_v18  ;;  %1623 = vmatprep.mubr.f32.mxu0 %v3205_v5  ;;  %v2011_v50 = vpop.permute.xlu0 %2010  ;;  %v2621_v57 = vpop.permute.xlu1 %2620 }
  0xaf   : > { %2977 = vmatmul.mubr.msk.f32.vlgmr.msra.gmra.mxu0 %vm291_vm3, %v2974_v45  ;;  %3103 = vmatprep.mubr.msk.f32.mxu1 %vm3206_vm1, %v3205_v5  ;;  %v2017_v54 = vsel %vm2016_vm10, %v2011_v50, %v2013_v46 }
  0xb0   : > { %2981 = vmatpush1.msk.msra.mxu0 %vm295_vm2, %v3330_v21  ;;  %3106 = vmatprep.subr.mxu1 %v3205_v5 }
  0xb1   : > { %3104 = vmatmul.mubr.msk.f32.vlgmr.msra.gmra.mxu1 %vm291_vm3, %v2973_v48  ;;  %2986 = vmatprep.subr.msk.mxu0 %vm295_vm2, %v1854_v47 }
  0xb2   : > { %3107 = vmatpush3.msk.msra.mxu1 %vm295_vm2, %v1851_v43  ;;  %1767 = vmatprep.mubr.f32.mxu0 %v3205_v5  ;;  %v2623_v59 = vpop.permute.xlu0 %2622  ;;  %v2619_v60 = vpop.permute.xlu1 %2618 }
  0xb3   : > { %2982 = vmatmul.mubr.msk.f32.vlgmr.msra.gmra.mxu0 %vm291_vm3, %v2973_v48  ;;  %3108 = vmatprep.mubr.msk.f32.mxu1 %vm3206_vm1, %v3205_v5  ;;  %v2626_v61 = vsel %vm2624_vm11, %v2621_v57, %v2623_v59  ;;  %v2625_v63 = vsel %vm2624_vm11, %v2619_v60, %v2621_v57 }
  0xb4   : > { %2987 = vmatpush1.msk.msra.mxu0 %vm295_vm2, %v1853_v53  ;;  %1928 = vmatprep.mubr.f32.mxu0 %v3205_v5 }
  0xb5   : > { %3109 = vmatmul.mubr.msk.f32.vlgmr.msra.gmra.mxu1 %vm291_vm3, %v2985_v51  ;;  %2992 = vmatprep.subr.msk.mxu0 %vm295_vm2, %v2018_v52 }
  0xb6   : > { %3111 = vmatprep.subr.mxu1 %v3205_v5  ;;  %3113 = vmatprep.mubr.msk.f32.mxu1 %vm3206_vm1, %v3205_v5 }
  0xb7   : > { %2988 = vmatmul.mubr.msk.f32.vlgmr.msra.gmra.mxu0 %vm291_vm3, %v2985_v51  ;;  %3112 = vmatpush3.msk.msra.mxu1 %vm295_vm2, %v2015_v49 }
  0xb8   : > { %2993 = vmatpush1.msk.msra.mxu0 %vm295_vm2, %v2017_v54  ;;  %3116 = vmatprep.subr.mxu1 %v3205_v5 }
  0xb9   : > { %2999 = vmatprep.subr.msk.mxu0 %vm295_vm2, %v3395_v39  ;;  %3114 = vmatmul.mubr.msk.f32.vlgmr.msra.gmra.mxu1 %vm291_vm3, %v2991_v55 }
  0xba   : > { %3117 = vmatpush3.msk.msra.mxu1 %vm295_vm2, %v3381_v36  ;;  %2092 = vmatprep.mubr.f32.mxu0 %v3205_v5 }
  0xbb   : > { %2994 = vmatmul.mubr.msk.f32.vlgmr.msra.gmra.mxu0 %vm291_vm3, %v2991_v55  ;;  %3118 = vmatprep.mubr.msk.f32.mxu1 %vm3206_vm1, %v3205_v5 }
  0xbc   : > { %3000 = vmatpush1.msk.msra.mxu0 %vm295_vm2, %v3403_v41  ;;  %3121 = vmatprep.subr.mxu1 %v3205_v5 }
  0xbd   : > { %3004 = vmatprep.subr.msk.mxu0 %vm295_vm2, %v3344_v25  ;;  %3119 = vmatmul.mubr.msk.f32.vlgmr.msra.gmra.mxu1 %vm291_vm3, %v2998_v56 }
  0xbe   : > { %3122 = vmatpush3.msk.msra.mxu1 %vm295_vm2, %v3332_v22  ;;  %2246 = vmatprep.mubr.f32.mxu0 %v3205_v5 }
  0xbf   : > { %3001 = vmatmul.mubr.msk.f32.vlgmr.msra.gmra.mxu0 %vm291_vm3, %v2998_v56  ;;  %3123 = vmatprep.mubr.msk.f32.mxu1 %vm3206_vm1, %v3205_v5  ;;  %v3552_v41 = vpop.permute.xlu0 %923 }
  0xc0   : > { %3005 = vmatpush1.msk.msra.mxu0 %vm295_vm2, %v3357_v28  ;;  %3126 = vmatprep.subr.mxu1 %v3205_v5 }
  0xc1   : > { %3010 = vmatprep.subr.msk.mxu0 %vm295_vm2, %v2018_v52  ;;  %3124 = vmatmul.mubr.msk.f32.vlgmr.msra.gmra.mxu1 %vm291_vm3, %v2997_v58 }
  0xc2   : > { %3127 = vmatpush3.msk.msra.mxu1 %vm295_vm2, %v2015_v49  ;;  %2390 = vmatprep.mubr.f32.mxu0 %v3205_v5 }
  0xc3   : > { %3006 = vmatmul.mubr.msk.f32.vlgmr.msra.gmra.mxu0 %vm291_vm3, %v2997_v58  ;;  %3128 = vmatprep.mubr.msk.f32.mxu1 %vm3206_vm1, %v3205_v5 }
  0xc4   : > { %3011 = vmatpush1.msk.msra.mxu0 %vm295_vm2, %v2017_v54  ;;  %2536 = vmatprep.mubr.f32.mxu0 %v3205_v5 }
  0xc5   : > { %3129 = vmatmul.mubr.msk.f32.vlgmr.msra.gmra.mxu1 %vm291_vm3, %v3009_v62  ;;  %3016 = vmatprep.subr.msk.mxu0 %vm295_vm2, %v2626_v61 }
  0xc6   : > { %3131 = vmatprep.subr.mxu1 %v3205_v5  ;;  %3133 = vmatprep.mubr.msk.f32.mxu1 %vm3206_vm1, %v3205_v5  ;;  %vm257_vm1 = vcmp.lt.s32.totalorder %v239_v27, 0 }
  0xc7   : > { %3012 = vmatmul.mubr.msk.f32.vlgmr.msra.gmra.mxu0 %vm291_vm3, %v3009_v62  ;;  %3132 = vmatpush3.msk.msra.mxu1 %vm295_vm2, %v2623_v59  ;;  %vm3554_vm4 = vmand %vm257_vm1, %vm254_vm0 }
  0xc8   : > { %3017 = vmatpush1.msk.msra.mxu0 %vm295_vm2, %v2625_v63  ;;  %2700 = vmatprep.mubr.f32.mxu0 %v3205_v5  ;;  %v226_v5 = vshrl.u32 %v3536_v9, 4  ;;  %vm3544_vm2 = vmand %vm258_vm13, %vm255_vm12  ;;  %v266_v53 = vsel %vm3554_vm4, %v263_v42, %v239_v27 }
  0xc9   : > { %3134 = vmatmul.mubr.msk.f32.vlgmr.msra.gmra.mxu1 %vm291_vm3, %v3015_v0  ;;  %v267_v45 = vsel %vm3544_vm2, %v264_v32, %v250_v23  ;;  %vm3574_vm7 = vcmp.lt.s32.totalorder %v266_v53, 16 }
  0xca   : > { %v227_v17 = vmul.u32 18, %v226_v5  ;;  %vm3565_vm5 = vcmp.lt.s32.totalorder %v267_v45, 16 }
  0xcb   : > { %3018 = vmatmul.mubr.msk.f32.vlgmr.msra.gmra.mxu0 %vm291_vm3, %v3015_v0 }
  0xcc   : > { %v228_v24 = vsub.s32 %v217_v2, %v227_v17 }
  0xce   : > { %vm253_vm14 = vcmp.ne.s32.totalorder %v228_v24, 0  ;;  %vm256_vm15 = vcmp.lt.s32.totalorder %v228_v24, 0  ;;  %v262_v35 = vadd.s32 18, %v228_v24 }
  0xcf   : > { %vm3548_vm3 = vmand %vm256_vm15, %vm253_vm14 }
  0xd0   : > { %v265_v48 = vsel %vm3548_vm3, %v262_v35, %v228_v24 }
  0xd1   : > { %vm3569_vm6 = vcmp.lt.s32.totalorder %v265_v48, 16 }
 0x148   : > { %v439_v13 = vpop.f32.mrf.mxu1 }
 0x14a   : > { %v3060_v15 = vpop.f32.mrf.mxu1 }
 0x14c   : > { %v589_v18 = vpop.f32.mrf.mxu1 }
 0x14d   : > { %v590_v21 = vadd.f32 %v589_v18, %v439_v13 }
 0x14e   : > { %v368_v20 = vpop.f32.mrf.mxu0  ;;  %v3065_v22 = vpop.f32.mrf.mxu1 }
 0x150   : > { %v370_v25 = vpop.f32.mrf.mxu0 }
 0x151   : > { %v750_v26 = vpop.f32.mrf.mxu1 }
 0x152   : > { %v518_v28 = vpop.f32.mrf.mxu0  ;;  %v756_v29 = vadd.f32 %v750_v26, %v590_v21 }
 0x153   : > { %v3070_v30 = vpop.f32.mrf.mxu1  ;;  %v519_v39 = vadd.f32 %v518_v28, %v368_v20 }
 0x154   : > { %v520_v31 = vpop.f32.mrf.mxu0 }
 0x155   : > { %v914_v33 = vpop.f32.mrf.mxu1  ;;  %v521_v46 = vadd.f32 %v520_v31, %v370_v25 }
 0x156   : > { %v679_v36 = vpop.f32.mrf.mxu0  ;;  %v920_v37 = vadd.f32 %v914_v33, %v756_v29 }
 0x157   : > { %v3075_v40 = vpop.f32.mrf.mxu1  ;;  %v754_v47 = vadd.f32 %v679_v36, %v519_v39 }
 0x158   : > { %v681_v43 = vpop.f32.mrf.mxu0  ;;  %v928_v50 = vadd.f32 %v3552_v41, %v920_v37 }
 0x159   : > { %v755_v51 = vadd.f32 %v681_v43, %v521_v46 }
 0x15a   : > { %v843_v49 = vpop.f32.mrf.mxu0  ;;  %v2791_v63 = vsel %vm3565_vm5, %v928_v50, 0.0 }
 0x15b   : > { %v918_v52 = vadd.f32 %v843_v49, %v754_v47  ;;  %v2801_v6 = vmul.f32 %v2791_v63, %v2791_v63  ;;  %v2794_v12 = vsel %vm2793_vm8, %v2791_v63, 0.0 }
 0x15c   : > { %v845_v55 = vpop.f32.mrf.mxu0  ;;  %v1088_v56 = vpop.f32.mrf.mxu1 }
 0x15d   : > { %v919_v58 = vadd.f32 %v845_v55, %v755_v51  ;;  %v926_v59 = vadd.f32 %v3552_v41, %v918_v52  ;;  %v2803_v17 = vsel %vm2793_vm8, %v2801_v6, 0.0 }
 0x15e   : > { %v1017_v60 = vpop.f32.mrf.mxu0  ;;  %v3080_v61 = vpop.f32.mrf.mxu1 }
 0x15f   : > { %v927_v0 = vadd.f32 %v3552_v41, %v919_v58  ;;  %v2789_v1 = vsel %vm3569_vm6, %v926_v59, 0.0 }
 0x160   : > { %v1019_v2 = vpop.f32.mrf.mxu0  ;;  %v2799_v8 = vmul.f32 %v2789_v1, %v2789_v1 }
 0x161   : > { %v1232_v3 = vpop.f32.mrf.mxu1  ;;  %v2790_v4 = vsel %vm3574_vm7, %v927_v0, 0.0 }
 0x162   : > { %v2792_v7 = vadd.f32 %v2790_v4, %v2789_v1  ;;  %v2800_v9 = vmul.f32 %v2790_v4, %v2790_v4  ;;  %v1233_v5 = vadd.f32 %v1232_v3, %v1088_v56 }
 0x163   : > { %v1161_v10 = vpop.f32.mrf.mxu0  ;;  %v3085_v11 = vpop.f32.mrf.mxu1 }
 0x164   : > { %v2795_v13 = vadd.f32 %v2794_v12, %v2792_v7  ;;  %v2802_v14 = vadd.f32 %v2800_v9, %v2799_v8  ;;  %v1162_v21 = vadd.f32 %v1161_v10, %v1017_v60 }
 0x165   : > { %v1163_v15 = vpop.f32.mrf.mxu0  ;;  %v1378_v16 = vpop.f32.mrf.mxu1 }
 0x166   : > { %2796 = vadd.xlane.f32.xlu1 %v2795_v13  ;;  %v2804_v18 = vadd.f32 %v2803_v17, %v2802_v14  ;;  %v1384_v22 = vadd.f32 %v1378_v16, %v1233_v5  ;;  %v1164_v25 = vadd.f32 %v1163_v15, %v1019_v2 }
 0x167   : > { %v1307_v19 = vpop.f32.mrf.mxu0  ;;  %v3090_v20 = vpop.f32.mrf.mxu1 }
 0x168   : > { %2805 = vadd.xlane.f32.xlu0 %v2804_v18  ;;  %v1382_v26 = vadd.f32 %v1307_v19, %v1162_v21 }
 0x169   : > { %v1309_v23 = vpop.f32.mrf.mxu0  ;;  %v1542_v24 = vpop.f32.mrf.mxu1 }
 0x16a   : > { %v1548_v27 = vadd.f32 %v1542_v24, %v1384_v22  ;;  %v1383_v30 = vadd.f32 %v1309_v23, %v1164_v25 }
 0x16b   : > { %v1471_v28 = vpop.f32.mrf.mxu0  ;;  %v3095_v29 = vpop.f32.mrf.mxu1 }
 0x16c   : > { %v1551_v31 = vadd.f32 %v1548_v27, %v3552_v41  ;;  %v1546_v32 = vadd.f32 %v1471_v28, %v1382_v26 }
 0x16d   : > { %v1473_v33 = vpop.f32.mrf.mxu0  ;;  %v1696_v34 = vpop.f32.mrf.mxu1 }
 0x16e   : > { %v1549_v35 = vadd.f32 %v1546_v32, %v3552_v41  ;;  %v1547_v36 = vadd.f32 %v1473_v33, %v1383_v30  ;;  %v2810_v39 = vsel %vm3565_vm5, %v1551_v31, 0.0 }
 0x16f   : > { %v1625_v37 = vpop.f32.mrf.mxu0  ;;  %v3100_v38 = vpop.f32.mrf.mxu1  ;;  %v2819_v46 = vmul.f32 %v2810_v39, %v2810_v39  ;;  %v2812_v53 = vsel %vm2793_vm8, %v2810_v39, 0.0 }
 0x170   : > { %v1550_v40 = vadd.f32 %v1547_v36, %v3552_v41  ;;  %v2808_v42 = vsel %vm3569_vm6, %v1549_v35, 0.0 }
 0x171   : > { %v1627_v43 = vpop.f32.mrf.mxu0  ;;  %v1840_v44 = vpop.f32.mrf.mxu1  ;;  %v2817_v50 = vmul.f32 %v2808_v42, %v2808_v42  ;;  %v2821_v60 = vsel %vm2793_vm8, %v2819_v46, 0.0 }
 0x172   : > { %v2809_v45 = vsel %vm3574_vm7, %v1550_v40, 0.0  ;;  %v1841_v52 = vadd.f32 %v1840_v44, %v1696_v34 }
 0x173   : > { %v1769_v47 = vpop.f32.mrf.mxu0  ;;  %v3105_v48 = vpop.f32.mrf.mxu1  ;;  %v2811_v49 = vadd.f32 %v2809_v45, %v2808_v42  ;;  %v2818_v51 = vmul.f32 %v2809_v45, %v2809_v45 }
 0x174   : > { %v1770_v1 = vadd.f32 %v1769_v47, %v1625_v37 }
 0x175   : > { %v1771_v55 = vpop.f32.mrf.mxu0  ;;  %v2001_v56 = vpop.f32.mrf.mxu1  ;;  %v2813_v58 = vadd.f32 %v2812_v53, %v2811_v49  ;;  %v2820_v59 = vadd.f32 %v2818_v51, %v2817_v50 }
 0x176   : > { %v2007_v2 = vadd.f32 %v2001_v56, %v1841_v52  ;;  %v1772_v6 = vadd.f32 %v1771_v55, %v1627_v43 }
 0x177   : > { %v1930_v61 = vpop.f32.mrf.mxu0  ;;  %v3110_v63 = vpop.f32.mrf.mxu1  ;;  %2814 = vadd.xlane.f32.xlu1 %v2813_v58  ;;  %v2822_v0 = vadd.f32 %v2821_v60, %v2820_v59 }
 0x178   : > { %v2005_v7 = vadd.f32 %v1930_v61, %v1770_v1 }
 0x179   : > { %v1932_v3 = vpop.f32.mrf.mxu0  ;;  %v2165_v4 = vpop.f32.mrf.mxu1  ;;  %2823 = vadd.xlane.f32.xlu0 %v2822_v0 }
 0x17a   : > { %v2171_v8 = vadd.f32 %v2165_v4, %v2007_v2  ;;  %v2006_v11 = vadd.f32 %v1932_v3, %v1772_v6 }
 0x17b   : > { %v2094_v9 = vpop.f32.mrf.mxu0  ;;  %v3115_v10 = vpop.f32.mrf.mxu1 }
 0x17c   : > { %v2174_v12 = vadd.f32 %v2171_v8, %v3552_v41  ;;  %v2169_v5 = vadd.f32 %v2094_v9, %v2005_v7 }
 0x17d   : > { %v2096_v13 = vpop.f32.mrf.mxu0  ;;  %v2319_v14 = vpop.f32.mrf.mxu1 }
 0x17e   : > { %v2172_v15 = vadd.f32 %v2169_v5, %v3552_v41  ;;  %v2170_v16 = vadd.f32 %v2096_v13, %v2006_v11  ;;  %v2828_v19 = vsel %vm3565_vm5, %v2174_v12, 0.0 }
 0x17f   : > { %v2248_v17 = vpop.f32.mrf.mxu0  ;;  %v3120_v18 = vpop.f32.mrf.mxu1  ;;  %v2837_v25 = vmul.f32 %v2828_v19, %v2828_v19  ;;  %v2830_v32 = vsel %vm2793_vm8, %v2828_v19, 0.0 }
 0x180   : > { %v2173_v20 = vadd.f32 %v2170_v16, %v3552_v41  ;;  %v2826_v21 = vsel %vm3569_vm6, %v2172_v15, 0.0  ;;  %v2866_v18 = vld [vmem:[%s3645_s4] sm:$0xff] }
 0x181   : > { %v2250_v22 = vpop.f32.mrf.mxu0  ;;  %v2463_v23 = vpop.f32.mrf.mxu1  ;;  %v2835_v29 = vmul.f32 %v2826_v21, %v2826_v21  ;;  %v2839_v37 = vsel %vm2793_vm8, %v2837_v25, 0.0 }
 0x182   : > { %v2827_v24 = vsel %vm3574_vm7, %v2173_v20, 0.0  ;;  %v2464_v31 = vadd.f32 %v2463_v23, %v2319_v14  ;;  %v2862_v14 = vld [vmem:[%s3644_s3] sm:$0xff] }
 0x183   : > { %v2392_v26 = vpop.f32.mrf.mxu0  ;;  %v3125_v27 = vpop.f32.mrf.mxu1  ;;  %v2829_v28 = vadd.f32 %v2827_v24, %v2826_v21  ;;  %v2836_v30 = vmul.f32 %v2827_v24, %v2827_v24 }
 0x184   : > { %v2393_v42 = vadd.f32 %v2392_v26, %v2248_v17 }
 0x185   : > { %v2394_v33 = vpop.f32.mrf.mxu0  ;;  %v2609_v34 = vpop.f32.mrf.mxu1  ;;  %v2831_v35 = vadd.f32 %v2830_v32, %v2829_v28  ;;  %v2838_v36 = vadd.f32 %v2836_v30, %v2835_v29 }
 0x186   : > { %v2615_v43 = vadd.f32 %v2609_v34, %v2464_v31  ;;  %v2395_v46 = vadd.f32 %v2394_v33, %v2250_v22 }
 0x187   : > { %v2538_v38 = vpop.f32.mrf.mxu0  ;;  %v3130_v39 = vpop.f32.mrf.mxu1  ;;  %2832 = vadd.xlane.f32.xlu1 %v2831_v35  ;;  %v2840_v40 = vadd.f32 %v2839_v37, %v2838_v36 }
 0x188   : > { %v2613_v47 = vadd.f32 %v2538_v38, %v2393_v42 }
 0x189   : > { %v2540_v44 = vpop.f32.mrf.mxu0  ;;  %v2773_v45 = vpop.f32.mrf.mxu1  ;;  %2841 = vadd.xlane.f32.xlu0 %v2840_v40 }
 0x18a   : > { %v2779_v48 = vadd.f32 %v2773_v45, %v2615_v43  ;;  %v2614_v51 = vadd.f32 %v2540_v44, %v2395_v46 }
 0x18b   : > { %v2702_v49 = vpop.f32.mrf.mxu0  ;;  %v3135_v50 = vpop.f32.mrf.mxu1 }
 0x18c   : > { %v2782_v52 = vadd.f32 %v2779_v48, %v3552_v41  ;;  %v2777_v53 = vadd.f32 %v2702_v49, %v2613_v47 }
 0x18d   : > { %v2704_v55 = vpop.f32.mrf.mxu0 }
 0x18e   : > { %v2780_v56 = vadd.f32 %v2777_v53, %v3552_v41  ;;  %v2778_v58 = vadd.f32 %v2704_v55, %v2614_v51  ;;  %v2846_v59 = vsel %vm3565_vm5, %v2782_v52, 0.0 }
 0x18f   : > { %v2855_v0 = vmul.f32 %v2846_v59, %v2846_v59  ;;  %v2848_v4 = vsel %vm2793_vm8, %v2846_v59, 0.0 }
 0x190   : > { %v2781_v60 = vadd.f32 %v2778_v58, %v3552_v41  ;;  %v2844_v61 = vsel %vm3569_vm6, %v2780_v56, 0.0 }
 0x191   : > { %v2853_v2 = vmul.f32 %v2844_v61, %v2844_v61  ;;  %v2857_v8 = vsel %vm2793_vm8, %v2855_v0, 0.0 }
 0x192   : > { %v2845_v63 = vsel %vm3574_vm7, %v2781_v60, 0.0 }
 0x193   : > { %v2847_v1 = vadd.f32 %v2845_v63, %v2844_v61  ;;  %v2854_v3 = vmul.f32 %v2845_v63, %v2845_v63 }
 0x195   : > { %v2849_v6 = vadd.f32 %v2848_v4, %v2847_v1  ;;  %v2856_v7 = vadd.f32 %v2854_v3, %v2853_v2 }
 0x197   : > { %2850 = vadd.xlane.f32.xlu1 %v2849_v6  ;;  %v2858_v54 = vadd.f32 %v2857_v8, %v2856_v7 }
 0x199   : > { %2859 = vadd.xlane.f32.xlu0 %v2858_v54 }
 0x1ef   : > { %v2797_v41 = vpop.xlane.xlu1 %2796 }
 0x1f1   : > { %v2806_v9 = vpop.xlane.xlu0 %2805 }
 0x200   : > { %v2815_v57 = vpop.xlane.xlu1 %2814 }
 0x201   : > { %v2816_v62 = vadd.f32 %v2815_v57, %v2797_v41 }
 0x202   : > { %v2824_v10 = vpop.xlane.xlu0 %2823 }
 0x203   : > { %v2825_v5 = vadd.f32 %v2824_v10, %v2806_v9 }
 0x210   : > { %v2833_v11 = vpop.xlane.xlu1 %2832 }
 0x211   : > { %v2834_v13 = vadd.f32 %v2833_v11, %v2816_v62 }
 0x212   : > { %v2842_v12 = vpop.xlane.xlu0 %2841 }
 0x213   : > { %v2843_v16 = vadd.f32 %v2842_v12, %v2825_v5 }
 0x220   : > { %v2851_v15 = vpop.xlane.xlu1 %2850 }
 0x221   : > { %v2852_v17 = vadd.f32 %v2851_v15, %v2834_v13 }
 0x222   : > { %v2860_v19 = vpop.xlane.xlu0 %2859 }
 0x223   : > { %v2863_v20 = vadd.f32 %v2862_v14, %v2852_v17  ;;  %v2861_v21 = vadd.f32 %v2860_v19, %v2843_v16 }
 0x225   : > { %2865 = vst.msk [vmem:[%s3644_s3] sm:$0xff] %vm2864_vm9, %v2863_v20  ;;  %v2867_v22 = vadd.f32 %v2866_v18, %v2861_v21 }
 0x227   : > { %2868 = vst.msk [vmem:[%s3645_s4] sm:$0xff] %vm2864_vm9, %v2867_v22 }
 0x228 PF: > { %s15_s17 = sadd.s32 1, %s3202_s17   ;;  %s3658_s15 = smov %s3198_s16 }
 0x229   : > { %p12_p6 = scmp.ge.s32.totalorder %s15_s17, 4   ;;  %s3659_s16 = smov %s3661_s18 }
 0x22b   :  { %14 = sbr.rel (!%p12_p6) target bundleno = 2 (0x2), region = 85 }

// kernel: upsample_forward.3
= control target key start
LH: loop header
LB: loop body
LE: loop exit
PB: predicated region body
PF: predicated region fallthrough
CT: control target
= control target key end

     0   :  { %s3246_s18 = smov 0   ;;  %s3248_s19 = smov 0   ;;  %s3624_s0 = inlined_call_operand.vmem [shape: f32[2,1,4,326], index: 0, kind: input, shape index: {}]   ;;  %s3625_s1 = inlined_call_operand.vmem [shape: f32[16,8,4], index: 1, kind: input, shape index: {}]   ;;  %s3626_s2 = inlined_call_operand.vmem [shape: f32[8,1], index: 2, kind: input, shape index: {}]   ;;  %s3627_s3 = inlined_call_operand.vmem [shape: f32[8,1], index: 3, kind: input, shape index: {}]   ;;  %s3628_s4 = inlined_call_operand.vmem [shape: f32[8,1], index: 4, kind: input, shape index: {}]   ;;  %s3629_s5 = inlined_call_operand.vmem [shape: f32[2,1,4,8,288], index: 5, kind: output, shape index: {}]  }
   0x1   :  { %s3250_s20 = smov 0  }
   0x2 LB: > { %s27_s21 = sadd.s32 1, %s3199_s19  ;;  %p2921_p0 = scmp.ge.s32.totalorder %s3203_s20, 1  ;;  %s3203_s20 = sphi %s3250_s20, %s15_s20   ;;  %s3199_s19 = sphi %s3248_s19, %s3631_s19   ;;  %s3195_s18 = sphi %s3246_s18, %s3630_s18  }
   0x3   : > { %p29_p1 = scmp.ge.s32.totalorder %s27_s21, 2  ;;  %p207_p2 = scmp.lt.s32.totalorder %s3203_s20, 3 }
   0x5   : > { %s3633_s21 = smov (%p29_p1, %s27_s21), 0  ;;  %p208_p3 = pnand %p2921_p0, %p207_p2 }
   0x6   : > { %p243_p4 = scmp.lt.s32.totalorder (!%p208_p3), %s3195_s18, 1  ;;  %s3207_s26 = smov (!%p208_p3), 127  }
   0x7   : > { %211 = sbr.rel (%p208_p3) target bundleno = 406 (0x196), region = 40  ;;  %s3208_s27 = smov (!%p208_p3), 110  }
   0x8   : > { %s3209_s28 = smov (!%p208_p3), 109   ;;  %s3210_s29 = smov (!%p208_p3), 126  }
   0x9   : > { %s3211_s30 = smov (!%p208_p3), 108   ;;  %s3212_s6 = smov (!%p208_p3), 92  }
   0xa   : > { %s3213_s7 = smov (!%p208_p3), 91   ;;  %s3214_s8 = smov (!%p208_p3), 90  }
   0xc   : > { %v3205_v0 = vmov 0.0   ;;  %vm3206_vm0 = vmmov 0   ;;  %s3635_s18 = smov (!%p243_p4, %s3195_s18), 1  ;;  %v261_v6 = vld [vmem:[%s3627_s3] sm:$0xff]  ;;  %v3215_v8 = vmov 0   ;;  %vm287_vm1 = vcmask 1043456  }
   0xd   : > { %3062 = vmatprep.subr.mxu1 %v3205_v0  ;;  %3064 = vmatprep.mubr.msk.f32.mxu1 %vm3206_vm0, %v3205_v0  ;;  %s3142_s22 = smul.u32 12, %s3635_s18  ;;  %v267_v7 = vld [vmem:[%s3626_s2] sm:$0xff]  ;;  %v2924_v10 = vld [vmem:[%s3625_s1 + $0x8] sm:$0xff]  ;;  %vm283_vm2 = vcmask 31744   ;;  %vm280_vm3 = vcmask 1039360   ;;  %vm593_vm4 = vcmask 900096  }
   0xe   : > { %358 = vmatprep.mubr.f32.mxu0 %v3205_v0  ;;  %3180 = vset.pattern.permute.xlu1 %v3215_v8  ;;  %v262_v9 = vld [vmem:[%s3628_s4] sm:$0xff]  ;;  %v2935_v20 = vld [vmem:[%s3625_s1 + $0x10] sm:$0xff]  ;;  %vm757_vm5 = vcmask 891904   ;;  %v2941_v25 = vld [vmem:[%s3625_s1 + $0x18] sm:$0xff]  ;;  %vm931_vm6 = vcmask 1031168   ;;  %vm1385_vm7 = vcmask 883712  }
   0xf   : > { %s251_s25 = scalar_lea.vmem %s3624_s0, %s3142_s22  ;;  %3179 = vset.pattern.permute.xlu0 %v3215_v8  ;;  %v268_v13 = vld [vmem:[%s3625_s1] sm:$0xff]  ;;  %v2948_v30 = vld [vmem:[%s3625_s1 + $0x28] sm:$0xff]  ;;  %v2959_v39 = vld [vmem:[%s3625_s1 + $0x30] sm:$0xff]  ;;  %vm1844_vm8 = vcmask 752640   ;;  %vm2008_vm9 = vcmask 744448   ;;  %vm2616_vm10 = vcmask 736256  }
  0x10   : > { %v264_v1 = vld [vmem:[%s251_s25 + $0x8] sm:$0xf]  ;;  %v263_v2 = vld [vmem:[%s251_s25] sm:$0xff]  ;;  %v2965_v43 = vld [vmem:[%s3625_s1 + $0x38] sm:$0xff]  ;;  %vm2793_vm11 = vcmask 261120  }
  0x11   : > { %v266_v3 = vmax.f32 %v264_v1, 0.0  ;;  %v3274_v4 = vmax.f32 %v263_v2, 0.0  ;;  %v2947_v36 = vld [vmem:[%s3625_s1 + $0x20] sm:$0xff]  ;;  %v2972_v46 = vld [vmem:[%s3625_s1 + $0x48] sm:$0xff]  ;;  %v2983_v52 = vld [vmem:[%s3625_s1 + $0x50] sm:$0xff] }
  0x12   : > { %v2971_v49 = vld [vmem:[%s3625_s1 + $0x40] sm:$0xff]  ;;  %v2989_v56 = vld [vmem:[%s3625_s1 + $0x58] sm:$0xff]  ;;  %v2996_v57 = vld [vmem:[%s3625_s1 + $0x68] sm:$0xff] }
  0x13   : > { %278 = vrot.lane.b32.xlu0 %v266_v3, %s3207_s26  ;;  %274 = vrot.lane.b32.xlu1 %v3274_v4, %s3207_s26  ;;  %v3279_v5 = vcombine.high %v3274_v4, %v3274_v4  ;;  %v2995_v59 = vld [vmem:[%s3625_s1 + $0x60] sm:$0xff]  ;;  %v3007_v63 = vld [vmem:[%s3625_s1 + $0x70] sm:$0xff] }
  0x14   : > { %v3013_v2 = vld [vmem:[%s3625_s1 + $0x78] sm:$0xff] }
  0x17   : > { %587 = vrot.lane.b32.xlu1 %v3274_v4, %s3208_s27  ;;  %276 = vrot.lane.b32.xlu0 %v3279_v5, %s3207_s26 }
  0x1b   : > { %589 = vrot.lane.b32.xlu1 %v3279_v5, %s3208_s27  ;;  %591 = vrot.lane.b32.xlu0 %v266_v3, %s3208_s27 }
  0x1f   : > { %755 = vrot.lane.b32.xlu1 %v266_v3, %s3209_s28  ;;  %753 = vrot.lane.b32.xlu0 %v3279_v5, %s3209_s28 }
  0x23   : > { %927 = vrot.lane.b32.xlu1 %v3279_v5, %s3210_s29  ;;  %751 = vrot.lane.b32.xlu0 %v3274_v4, %s3209_s28 }
  0x27   : > { %925 = vrot.lane.b32.xlu1 %v3274_v4, %s3210_s29  ;;  %929 = vrot.lane.b32.xlu0 %v266_v3, %s3210_s29 }
  0x2b   : > { %1381 = vrot.lane.b32.xlu0 %v3279_v5, %s3211_s30  ;;  %1383 = vrot.lane.b32.xlu1 %v266_v3, %s3211_s30 }
  0x2f   : > { %1379 = vrot.lane.b32.xlu0 %v3274_v4, %s3211_s30  ;;  %1840 = vrot.lane.b32.xlu1 %v3279_v5, %s3212_s6  ;;  %s3143_s30 = smul.u32 96, %s3635_s18 }
  0x33   : > { %1842 = vrot.lane.b32.xlu0 %v266_v3, %s3212_s6  ;;  %1838 = vrot.lane.b32.xlu1 %v3274_v4, %s3212_s6 }
  0x37   : > { %2004 = vrot.lane.b32.xlu0 %v3279_v5, %s3213_s7  ;;  %2006 = vrot.lane.b32.xlu1 %v266_v3, %s3213_s7 }
  0x3b   : > { %2002 = vrot.lane.b32.xlu0 %v3274_v4, %s3213_s7  ;;  %2612 = vrot.lane.b32.xlu1 %v3279_v5, %s3214_s8 }
  0x3f   : > { %2610 = vrot.lane.b32.xlu1 %v3274_v4, %s3214_s8  ;;  %2614 = vrot.lane.b32.xlu0 %v266_v3, %s3214_s8  ;;  %s3563_s8 = scalar_lea.vmem %s3629_s5, %s3143_s30 }
  0x43   : > { %2777 = vperm.xlu1 %3180, %v261_v6   ;;  %915 = vperm.xlu0 %3179, %v267_v7  }
  0x47   : > { %2785 = vperm.xlu1 %3180, %v262_v9  }
  0x85   : > { %v3308_v11 = vpop.permute.xlu0 %278  ;;  %v275_v12 = vpop.permute.xlu1 %274 }
  0x86   : > { %3063 = vmatpush3.msk.msra.mxu1 %vm287_vm1, %v3308_v11 }
  0x87   : > { %3065 = vmatmul.mubr.msk.f32.vlgmr.msra.gmra.mxu1 %vm283_vm2, %v2924_v10  ;;  %3067 = vmatprep.subr.mxu1 %v3205_v0 }
  0x88   : > { %3068 = vmatpush3.msk.msra.mxu1 %vm287_vm1, %v266_v3  ;;  %3069 = vmatprep.mubr.msk.f32.mxu1 %vm3206_vm0, %v3205_v0 }
  0x89   : > { %v588_v14 = vpop.permute.xlu1 %587  ;;  %v277_v15 = vpop.permute.xlu0 %276  ;;  %3072 = vmatprep.subr.mxu1 %v3205_v0 }
  0x8a   : > { %v282_v16 = vsel %vm280_vm3, %v277_v15, %v3308_v11  ;;  %v281_v17 = vsel %vm280_vm3, %v275_v12, %v277_v15 }
  0x8b   : > { %2925 = vmatprep.subr.msk.mxu0 %vm287_vm1, %v282_v16  ;;  %3070 = vmatmul.mubr.msk.f32.vlgmr.msra.gmra.mxu1 %vm283_vm2, %v268_v13 }
  0x8c   : > { %2926 = vmatpush1.msk.msra.mxu0 %vm287_vm1, %v281_v17  ;;  %3074 = vmatprep.mubr.msk.f32.mxu1 %vm3206_vm0, %v3205_v0 }
  0x8d   : > { %v590_v18 = vpop.permute.xlu1 %589  ;;  %2927 = vmatmul.mubr.msk.f32.vlgmr.msra.gmra.mxu0 %vm283_vm2, %v2924_v10  ;;  %2930 = vmatprep.subr.msk.mxu0 %vm287_vm1, %v3279_v5  ;;  %v3330_v19 = vpop.permute.xlu0 %591 }
  0x8e   : > { %2931 = vmatpush1.msk.msra.mxu0 %vm287_vm1, %v3274_v4  ;;  %3073 = vmatpush3.msk.msra.mxu1 %vm287_vm1, %v3330_v19  ;;  %v3341_v21 = vsel %vm593_vm4, %v590_v18, %v3330_v19  ;;  %v3349_v22 = vsel %vm593_vm4, %v588_v14, %v590_v18 }
  0x8f   : > { %2936 = vmatprep.subr.msk.mxu0 %vm287_vm1, %v3341_v21  ;;  %508 = vmatprep.mubr.f32.mxu0 %v3205_v0 }
  0x90   : > { %3075 = vmatmul.mubr.msk.f32.vlgmr.msra.gmra.mxu1 %vm283_vm2, %v2935_v20  ;;  %3077 = vmatprep.subr.mxu1 %v3205_v0 }
  0x91   : > { %v3351_v23 = vpop.permute.xlu1 %755  ;;  %2932 = vmatmul.mubr.msk.f32.vlgmr.msra.gmra.mxu0 %vm283_vm2, %v268_v13  ;;  %v754_v24 = vpop.permute.xlu0 %753  ;;  %3079 = vmatprep.mubr.msk.f32.mxu1 %vm3206_vm0, %v3205_v0 }
  0x92   : > { %2937 = vmatpush1.msk.msra.mxu0 %vm287_vm1, %v3349_v22  ;;  %v3363_v26 = vsel %vm757_vm5, %v754_v24, %v3351_v23  ;;  %3078 = vmatpush3.msk.msra.mxu1 %vm287_vm1, %v3351_v23 }
  0x93   : > { %2942 = vmatprep.subr.msk.mxu0 %vm287_vm1, %v3363_v26  ;;  %669 = vmatprep.mubr.f32.mxu0 %v3205_v0 }
  0x94   : > { %3080 = vmatmul.mubr.msk.f32.vlgmr.msra.gmra.mxu1 %vm283_vm2, %v2941_v25  ;;  %3082 = vmatprep.subr.mxu1 %v3205_v0 }
  0x95   : > { %v928_v27 = vpop.permute.xlu1 %927  ;;  %2938 = vmatmul.mubr.msk.f32.vlgmr.msra.gmra.mxu0 %vm283_vm2, %v2935_v20  ;;  %v752_v28 = vpop.permute.xlu0 %751  ;;  %3084 = vmatprep.mubr.msk.f32.mxu1 %vm3206_vm0, %v3205_v0 }
  0x96   : > { %v3376_v29 = vsel %vm757_vm5, %v752_v28, %v754_v24  ;;  %833 = vmatprep.mubr.f32.mxu0 %v3205_v0 }
  0x97   : > { %2943 = vmatpush1.msk.msra.mxu0 %vm287_vm1, %v3376_v29 }
  0x99   : > { %v926_v31 = vpop.permute.xlu1 %925  ;;  %2944 = vmatmul.mubr.msk.f32.vlgmr.msra.gmra.mxu0 %vm283_vm2, %v2941_v25  ;;  %v930_v32 = vpop.permute.xlu0 %929 }
  0x9a   : > { %v932_v33 = vsel %vm931_vm6, %v926_v31, %v928_v27  ;;  %v933_v34 = vsel %vm931_vm6, %v928_v27, %v930_v32  ;;  %3083 = vmatpush3.msk.msra.mxu1 %vm287_vm1, %v930_v32  ;;  %1007 = vmatprep.mubr.f32.mxu0 %v3205_v0 }
  0x9b   : > { %2949 = vmatprep.subr.msk.mxu0 %vm287_vm1, %v933_v34  ;;  %3085 = vmatmul.mubr.msk.f32.vlgmr.msra.gmra.mxu1 %vm283_vm2, %v2948_v30 }
  0x9c   : > { %3087 = vmatprep.subr.mxu1 %v3205_v0  ;;  %2950 = vmatpush1.msk.msra.mxu0 %vm287_vm1, %v932_v33 }
  0x9d   : > { %3088 = vmatpush3.msk.msra.mxu1 %vm287_vm1, %v3308_v11  ;;  %2951 = vmatmul.mubr.msk.f32.vlgmr.msra.gmra.mxu0 %vm283_vm2, %v2948_v30  ;;  %v1382_v35 = vpop.permute.xlu0 %1381  ;;  %v3400_v37 = vpop.permute.xlu1 %1383 }
  0x9e   : > { %2954 = vmatprep.subr.msk.mxu0 %vm287_vm1, %v282_v16  ;;  %3089 = vmatprep.mubr.msk.f32.mxu1 %vm3206_vm0, %v3205_v0  ;;  %v3414_v40 = vsel %vm1385_vm7, %v1382_v35, %v3400_v37 }
  0x9f   : > { %2955 = vmatpush1.msk.msra.mxu0 %vm287_vm1, %v281_v17  ;;  %3092 = vmatprep.subr.mxu1 %v3205_v0 }
  0xa0   : > { %3090 = vmatmul.mubr.msk.f32.vlgmr.msra.gmra.mxu1 %vm283_vm2, %v2947_v36  ;;  %2960 = vmatprep.subr.msk.mxu0 %vm287_vm1, %v3363_v26 }
  0xa1   : > { %3093 = vmatpush3.msk.msra.mxu1 %vm287_vm1, %v3351_v23  ;;  %1151 = vmatprep.mubr.f32.mxu0 %v3205_v0  ;;  %v1380_v38 = vpop.permute.xlu0 %1379  ;;  %v1841_v41 = vpop.permute.xlu1 %1840 }
  0xa2   : > { %2956 = vmatmul.mubr.msk.f32.vlgmr.msra.gmra.mxu0 %vm283_vm2, %v2947_v36  ;;  %3094 = vmatprep.mubr.msk.f32.mxu1 %vm3206_vm0, %v3205_v0  ;;  %v3422_v42 = vsel %vm1385_vm7, %v1380_v38, %v1382_v35 }
  0xa3   : > { %2961 = vmatpush1.msk.msra.mxu0 %vm287_vm1, %v3376_v29  ;;  %1297 = vmatprep.mubr.f32.mxu0 %v3205_v0 }
  0xa4   : > { %3095 = vmatmul.mubr.msk.f32.vlgmr.msra.gmra.mxu1 %vm283_vm2, %v2959_v39  ;;  %2966 = vmatprep.subr.msk.mxu0 %vm287_vm1, %v3414_v40 }
  0xa5   : > { %3097 = vmatprep.subr.mxu1 %v3205_v0  ;;  %3099 = vmatprep.mubr.msk.f32.mxu1 %vm3206_vm0, %v3205_v0  ;;  %v1843_v44 = vpop.permute.xlu0 %1842  ;;  %v1839_v45 = vpop.permute.xlu1 %1838 }
  0xa6   : > { %2962 = vmatmul.mubr.msk.f32.vlgmr.msra.gmra.mxu0 %vm283_vm2, %v2959_v39  ;;  %3098 = vmatpush3.msk.msra.mxu1 %vm287_vm1, %v3400_v37  ;;  %v1846_v48 = vsel %vm1844_vm8, %v1841_v41, %v1843_v44  ;;  %v1845_v54 = vsel %vm1844_vm8, %v1839_v45, %v1841_v41 }
  0xa7   : > { %2967 = vmatpush1.msk.msra.mxu0 %vm287_vm1, %v3422_v42  ;;  %3102 = vmatprep.subr.mxu1 %v3205_v0 }
  0xa8   : > { %2973 = vmatprep.subr.msk.mxu0 %vm287_vm1, %v3363_v26  ;;  %3100 = vmatmul.mubr.msk.f32.vlgmr.msra.gmra.mxu1 %vm283_vm2, %v2965_v43 }
  0xa9   : > { %3103 = vmatpush3.msk.msra.mxu1 %vm287_vm1, %v3351_v23  ;;  %1461 = vmatprep.mubr.f32.mxu0 %v3205_v0  ;;  %v2005_v47 = vpop.permute.xlu0 %2004  ;;  %v2007_v50 = vpop.permute.xlu1 %2006 }
  0xaa   : > { %2968 = vmatmul.mubr.msk.f32.vlgmr.msra.gmra.mxu0 %vm283_vm2, %v2965_v43  ;;  %3104 = vmatprep.mubr.msk.f32.mxu1 %vm3206_vm0, %v3205_v0  ;;  %v2010_v53 = vsel %vm2008_vm9, %v2005_v47, %v2007_v50 }
  0xab   : > { %2974 = vmatpush1.msk.msra.mxu0 %vm287_vm1, %v3376_v29  ;;  %3107 = vmatprep.subr.mxu1 %v3205_v0 }
  0xac   : > { %2978 = vmatprep.subr.msk.mxu0 %vm287_vm1, %v3341_v21  ;;  %3105 = vmatmul.mubr.msk.f32.vlgmr.msra.gmra.mxu1 %vm283_vm2, %v2972_v46 }
  0xad   : > { %3108 = vmatpush3.msk.msra.mxu1 %vm287_vm1, %v3330_v19  ;;  %1615 = vmatprep.mubr.f32.mxu0 %v3205_v0  ;;  %v2003_v51 = vpop.permute.xlu0 %2002  ;;  %v2613_v58 = vpop.permute.xlu1 %2612 }
  0xae   : > { %2975 = vmatmul.mubr.msk.f32.vlgmr.msra.gmra.mxu0 %vm283_vm2, %v2972_v46  ;;  %3109 = vmatprep.mubr.msk.f32.mxu1 %vm3206_vm0, %v3205_v0  ;;  %v2009_v55 = vsel %vm2008_vm9, %v2003_v51, %v2005_v47 }
  0xaf   : > { %2979 = vmatpush1.msk.msra.mxu0 %vm287_vm1, %v3349_v22  ;;  %3112 = vmatprep.subr.mxu1 %v3205_v0 }
  0xb0   : > { %3110 = vmatmul.mubr.msk.f32.vlgmr.msra.gmra.mxu1 %vm283_vm2, %v2971_v49  ;;  %2984 = vmatprep.subr.msk.mxu0 %vm287_vm1, %v1846_v48 }
  0xb1   : > { %3113 = vmatpush3.msk.msra.mxu1 %vm287_vm1, %v1843_v44  ;;  %1759 = vmatprep.mubr.f32.mxu0 %v3205_v0  ;;  %v2615_v60 = vpop.permute.xlu0 %2614  ;;  %v2611_v61 = vpop.permute.xlu1 %2610 }
  0xb2   : > { %2980 = vmatmul.mubr.msk.f32.vlgmr.msra.gmra.mxu0 %vm283_vm2, %v2971_v49  ;;  %3114 = vmatprep.mubr.msk.f32.mxu1 %vm3206_vm0, %v3205_v0  ;;  %v2618_v62 = vsel %vm2616_vm10, %v2613_v58, %v2615_v60  ;;  %v2617_v1 = vsel %vm2616_vm10, %v2611_v61, %v2613_v58 }
  0xb3   : > { %2985 = vmatpush1.msk.msra.mxu0 %vm287_vm1, %v1845_v54  ;;  %1920 = vmatprep.mubr.f32.mxu0 %v3205_v0 }
  0xb4   : > { %3115 = vmatmul.mubr.msk.f32.vlgmr.msra.gmra.mxu1 %vm283_vm2, %v2983_v52  ;;  %2990 = vmatprep.subr.msk.mxu0 %vm287_vm1, %v2010_v53 }
  0xb5   : > { %3117 = vmatprep.subr.mxu1 %v3205_v0  ;;  %3119 = vmatprep.mubr.msk.f32.mxu1 %vm3206_vm0, %v3205_v0 }
  0xb6   : > { %2986 = vmatmul.mubr.msk.f32.vlgmr.msra.gmra.mxu0 %vm283_vm2, %v2983_v52  ;;  %3118 = vmatpush3.msk.msra.mxu1 %vm287_vm1, %v2007_v50 }
  0xb7   : > { %2991 = vmatpush1.msk.msra.mxu0 %vm287_vm1, %v2009_v55  ;;  %3122 = vmatprep.subr.mxu1 %v3205_v0 }
  0xb8   : > { %2997 = vmatprep.subr.msk.mxu0 %vm287_vm1, %v3414_v40  ;;  %3120 = vmatmul.mubr.msk.f32.vlgmr.msra.gmra.mxu1 %vm283_vm2, %v2989_v56 }
  0xb9   : > { %3123 = vmatpush3.msk.msra.mxu1 %vm287_vm1, %v3400_v37  ;;  %2084 = vmatprep.mubr.f32.mxu0 %v3205_v0 }
  0xba   : > { %2992 = vmatmul.mubr.msk.f32.vlgmr.msra.gmra.mxu0 %vm283_vm2, %v2989_v56  ;;  %3124 = vmatprep.mubr.msk.f32.mxu1 %vm3206_vm0, %v3205_v0 }
  0xbb   : > { %2998 = vmatpush1.msk.msra.mxu0 %vm287_vm1, %v3422_v42  ;;  %3127 = vmatprep.subr.mxu1 %v3205_v0 }
  0xbc   : > { %3002 = vmatprep.subr.msk.mxu0 %vm287_vm1, %v3363_v26  ;;  %3125 = vmatmul.mubr.msk.f32.vlgmr.msra.gmra.mxu1 %vm283_vm2, %v2996_v57 }
  0xbd   : > { %3128 = vmatpush3.msk.msra.mxu1 %vm287_vm1, %v3351_v23  ;;  %2238 = vmatprep.mubr.f32.mxu0 %v3205_v0 }
  0xbe   : > { %2999 = vmatmul.mubr.msk.f32.vlgmr.msra.gmra.mxu0 %vm283_vm2, %v2996_v57  ;;  %3129 = vmatprep.mubr.msk.f32.mxu1 %vm3206_vm0, %v3205_v0  ;;  %v3551_v14 = vpop.permute.xlu1 %2777  ;;  %v3553_v16 = vpop.permute.xlu0 %915 }
  0xbf   : > { %3003 = vmatpush1.msk.msra.mxu0 %vm287_vm1, %v3376_v29  ;;  %3132 = vmatprep.subr.mxu1 %v3205_v0 }
  0xc0   : > { %3008 = vmatprep.subr.msk.mxu0 %vm287_vm1, %v2010_v53  ;;  %3130 = vmatmul.mubr.msk.f32.vlgmr.msra.gmra.mxu1 %vm283_vm2, %v2995_v59 }
  0xc1   : > { %3133 = vmatpush3.msk.msra.mxu1 %vm287_vm1, %v2007_v50  ;;  %2382 = vmatprep.mubr.f32.mxu0 %v3205_v0 }
  0xc2   : > { %3004 = vmatmul.mubr.msk.f32.vlgmr.msra.gmra.mxu0 %vm283_vm2, %v2995_v59  ;;  %3134 = vmatprep.mubr.msk.f32.mxu1 %vm3206_vm0, %v3205_v0  ;;  %v3557_v25 = vpop.permute.xlu1 %2785 }
  0xc3   : > { %3009 = vmatpush1.msk.msra.mxu0 %vm287_vm1, %v2009_v55  ;;  %2528 = vmatprep.mubr.f32.mxu0 %v3205_v0 }
  0xc4   : > { %3135 = vmatmul.mubr.msk.f32.vlgmr.msra.gmra.mxu1 %vm283_vm2, %v3007_v63  ;;  %3014 = vmatprep.subr.msk.mxu0 %vm287_vm1, %v2618_v62 }
  0xc5   : > { %3137 = vmatprep.subr.mxu1 %v3205_v0  ;;  %3139 = vmatprep.mubr.msk.f32.mxu1 %vm3206_vm0, %v3205_v0 }
  0xc6   : > { %3010 = vmatmul.mubr.msk.f32.vlgmr.msra.gmra.mxu0 %vm283_vm2, %v3007_v63  ;;  %3138 = vmatpush3.msk.msra.mxu1 %vm287_vm1, %v2615_v60 }
  0xc7   : > { %3015 = vmatpush1.msk.msra.mxu0 %vm287_vm1, %v2617_v1  ;;  %2692 = vmatprep.mubr.f32.mxu0 %v3205_v0 }
  0xc8   : > { %3140 = vmatmul.mubr.msk.f32.vlgmr.msra.gmra.mxu1 %vm283_vm2, %v3013_v2 }
  0xca   : > { %3016 = vmatmul.mubr.msk.f32.vlgmr.msra.gmra.mxu0 %vm283_vm2, %v3013_v2 }
 0x147   : > { %v431_v3 = vpop.f32.mrf.mxu1 }
 0x149   : > { %v3066_v4 = vpop.f32.mrf.mxu1 }
 0x14b   : > { %v581_v5 = vpop.f32.mrf.mxu1 }
 0x14c   : > { %v582_v7 = vadd.f32 %v581_v5, %v431_v3 }
 0x14d   : > { %v360_v6 = vpop.f32.mrf.mxu0  ;;  %v3071_v8 = vpop.f32.mrf.mxu1 }
 0x14f   : > { %v362_v9 = vpop.f32.mrf.mxu0 }
 0x150   : > { %v742_v10 = vpop.f32.mrf.mxu1 }
 0x151   : > { %v510_v11 = vpop.f32.mrf.mxu0  ;;  %v748_v12 = vadd.f32 %v742_v10, %v582_v7 }
 0x152   : > { %v3076_v13 = vpop.f32.mrf.mxu1  ;;  %v511_v19 = vadd.f32 %v510_v11, %v360_v6 }
 0x153   : > { %v512_v15 = vpop.f32.mrf.mxu0 }
 0x154   : > { %v906_v0 = vpop.f32.mrf.mxu1  ;;  %v513_v23 = vadd.f32 %v512_v15, %v362_v9 }
 0x155   : > { %v671_v17 = vpop.f32.mrf.mxu0  ;;  %v912_v18 = vadd.f32 %v906_v0, %v748_v12 }
 0x156   : > { %v3081_v20 = vpop.f32.mrf.mxu1  ;;  %v746_v24 = vadd.f32 %v671_v17, %v511_v19 }
 0x157   : > { %v673_v21 = vpop.f32.mrf.mxu0  ;;  %v920_v22 = vadd.f32 %v3553_v16, %v912_v18 }
 0x158   : > { %v747_v28 = vadd.f32 %v673_v21, %v513_v23 }
 0x159   : > { %v835_v26 = vpop.f32.mrf.mxu0  ;;  %v2782_v27 = vmul.f32 %v3551_v14, %v920_v22 }
 0x15a   : > { %v910_v29 = vadd.f32 %v835_v26, %v746_v24 }
 0x15b   : > { %v837_v30 = vpop.f32.mrf.mxu0  ;;  %v1080_v31 = vpop.f32.mrf.mxu1  ;;  %v2790_v32 = vadd.f32 %v3557_v25, %v2782_v27 }
 0x15c   : > { %v918_v33 = vadd.f32 %v3553_v16, %v910_v29  ;;  %v911_v34 = vadd.f32 %v837_v30, %v747_v28 }
 0x15d   : > { %v1009_v35 = vpop.f32.mrf.mxu0  ;;  %v3086_v36 = vpop.f32.mrf.mxu1  ;;  %2794 = vst.msk [vmem:[%s3563_s8 + $0x10] sm:$0xff] %vm2793_vm11, %v2790_v32 }
 0x15e   : > { %v2780_v37 = vmul.f32 %v3551_v14, %v918_v33  ;;  %v919_v38 = vadd.f32 %v3553_v16, %v911_v34 }
 0x15f   : > { %v1011_v39 = vpop.f32.mrf.mxu0 }
 0x160   : > { %v2781_v40 = vmul.f32 %v3551_v14, %v919_v38  ;;  %v2788_v41 = vadd.f32 %v3557_v25, %v2780_v37  ;;  %v1224_v42 = vpop.f32.mrf.mxu1 }
 0x161   : > { %v1225_v48 = vadd.f32 %v1224_v42, %v1080_v31 }
 0x162   : > { %v2789_v43 = vadd.f32 %v3557_v25, %v2781_v40  ;;  %2791 = vst [vmem:[%s3563_s8] sm:$0xff] %v2788_v41  ;;  %v1153_v44 = vpop.f32.mrf.mxu0  ;;  %v3091_v45 = vpop.f32.mrf.mxu1 }
 0x163   : > { %v1154_v51 = vadd.f32 %v1153_v44, %v1009_v35 }
 0x164   : > { %2792 = vst [vmem:[%s3563_s8 + $0x8] sm:$0xff] %v2789_v43  ;;  %v1155_v46 = vpop.f32.mrf.mxu0  ;;  %v1370_v47 = vpop.f32.mrf.mxu1 }
 0x165   : > { %v1376_v52 = vadd.f32 %v1370_v47, %v1225_v48  ;;  %v1156_v55 = vadd.f32 %v1155_v46, %v1011_v39 }
 0x166   : > { %v1299_v49 = vpop.f32.mrf.mxu0  ;;  %v3096_v50 = vpop.f32.mrf.mxu1 }
 0x167   : > { %v1374_v56 = vadd.f32 %v1299_v49, %v1154_v51 }
 0x168   : > { %v1301_v53 = vpop.f32.mrf.mxu0  ;;  %v1534_v54 = vpop.f32.mrf.mxu1 }
 0x169   : > { %v1540_v57 = vadd.f32 %v1534_v54, %v1376_v52  ;;  %v1375_v60 = vadd.f32 %v1301_v53, %v1156_v55 }
 0x16a   : > { %v1463_v58 = vpop.f32.mrf.mxu0  ;;  %v3101_v59 = vpop.f32.mrf.mxu1 }
 0x16b   : > { %v1543_v61 = vadd.f32 %v1540_v57, %v3553_v16  ;;  %v1538_v62 = vadd.f32 %v1463_v58, %v1374_v56 }
 0x16c   : > { %v1465_v63 = vpop.f32.mrf.mxu0  ;;  %v1688_v1 = vpop.f32.mrf.mxu1 }
 0x16d   : > { %v2797_v2 = vmul.f32 %v3551_v14, %v1543_v61  ;;  %v1541_v3 = vadd.f32 %v1538_v62, %v3553_v16  ;;  %v1539_v4 = vadd.f32 %v1465_v63, %v1375_v60 }
 0x16e   : > { %v1617_v5 = vpop.f32.mrf.mxu0  ;;  %v3106_v6 = vpop.f32.mrf.mxu1 }
 0x16f   : > { %v2800_v7 = vadd.f32 %v2797_v2, %v3557_v25  ;;  %v2795_v8 = vmul.f32 %v3551_v14, %v1541_v3  ;;  %v1542_v9 = vadd.f32 %v1539_v4, %v3553_v16 }
 0x170   : > { %v1619_v10 = vpop.f32.mrf.mxu0  ;;  %v1832_v11 = vpop.f32.mrf.mxu1 }
 0x171   : > { %3021 = vst.msk [vmem:[%s3563_s8 + $0x28] sm:$0xff] %vm2793_vm11, %v2800_v7  ;;  %v2798_v12 = vadd.f32 %v2795_v8, %v3557_v25  ;;  %v2796_v13 = vmul.f32 %v3551_v14, %v1542_v9  ;;  %v1833_v20 = vadd.f32 %v1832_v11, %v1688_v1 }
 0x172   : > { %v1761_v15 = vpop.f32.mrf.mxu0  ;;  %v3111_v0 = vpop.f32.mrf.mxu1 }
 0x173   : > { %3019 = vst [vmem:[%s3563_s8 + $0x18] sm:$0xff] %v2798_v12  ;;  %v2799_v17 = vadd.f32 %v2796_v13, %v3557_v25  ;;  %v1762_v23 = vadd.f32 %v1761_v15, %v1617_v5 }
 0x174   : > { %v1763_v18 = vpop.f32.mrf.mxu0  ;;  %v1993_v19 = vpop.f32.mrf.mxu1 }
 0x175   : > { %3020 = vst [vmem:[%s3563_s8 + $0x20] sm:$0xff] %v2799_v17  ;;  %v1999_v24 = vadd.f32 %v1993_v19, %v1833_v20  ;;  %v1764_v28 = vadd.f32 %v1763_v18, %v1619_v10 }
 0x176   : > { %v1922_v21 = vpop.f32.mrf.mxu0  ;;  %v3116_v22 = vpop.f32.mrf.mxu1 }
 0x177   : > { %v1997_v29 = vadd.f32 %v1922_v21, %v1762_v23 }
 0x178   : > { %v1924_v26 = vpop.f32.mrf.mxu0  ;;  %v2157_v27 = vpop.f32.mrf.mxu1 }
 0x179   : > { %v2163_v30 = vadd.f32 %v2157_v27, %v1999_v24  ;;  %v1998_v33 = vadd.f32 %v1924_v26, %v1764_v28 }
 0x17a   : > { %v2086_v31 = vpop.f32.mrf.mxu0  ;;  %v3121_v32 = vpop.f32.mrf.mxu1 }
 0x17b   : > { %v2166_v34 = vadd.f32 %v2163_v30, %v3553_v16  ;;  %v2161_v35 = vadd.f32 %v2086_v31, %v1997_v29 }
 0x17c   : > { %v2088_v36 = vpop.f32.mrf.mxu0  ;;  %v2311_v37 = vpop.f32.mrf.mxu1 }
 0x17d   : > { %v2807_v38 = vmul.f32 %v3551_v14, %v2166_v34  ;;  %v2164_v39 = vadd.f32 %v2161_v35, %v3553_v16  ;;  %v2162_v40 = vadd.f32 %v2088_v36, %v1998_v33 }
 0x17e   : > { %v2240_v41 = vpop.f32.mrf.mxu0  ;;  %v3126_v42 = vpop.f32.mrf.mxu1 }
 0x17f   : > { %v2810_v43 = vadd.f32 %v2807_v38, %v3557_v25  ;;  %v2805_v44 = vmul.f32 %v3551_v14, %v2164_v39  ;;  %v2165_v45 = vadd.f32 %v2162_v40, %v3553_v16 }
 0x180   : > { %v2242_v46 = vpop.f32.mrf.mxu0  ;;  %v2455_v47 = vpop.f32.mrf.mxu1 }
 0x181   : > { %3024 = vst.msk [vmem:[%s3563_s8 + $0x40] sm:$0xff] %vm2793_vm11, %v2810_v43  ;;  %v2808_v48 = vadd.f32 %v2805_v44, %v3557_v25  ;;  %v2806_v49 = vmul.f32 %v3551_v14, %v2165_v45  ;;  %v2456_v55 = vadd.f32 %v2455_v47, %v2311_v37 }
 0x182   : > { %v2384_v50 = vpop.f32.mrf.mxu0  ;;  %v3131_v51 = vpop.f32.mrf.mxu1 }
 0x183   : > { %3022 = vst [vmem:[%s3563_s8 + $0x30] sm:$0xff] %v2808_v48  ;;  %v2809_v52 = vadd.f32 %v2806_v49, %v3557_v25  ;;  %v2385_v58 = vadd.f32 %v2384_v50, %v2240_v41 }
 0x184   : > { %v2386_v53 = vpop.f32.mrf.mxu0  ;;  %v2601_v54 = vpop.f32.mrf.mxu1 }
 0x185   : > { %3023 = vst [vmem:[%s3563_s8 + $0x38] sm:$0xff] %v2809_v52  ;;  %v2607_v59 = vadd.f32 %v2601_v54, %v2456_v55  ;;  %v2387_v62 = vadd.f32 %v2386_v53, %v2242_v46 }
 0x186   : > { %v2530_v56 = vpop.f32.mrf.mxu0  ;;  %v3136_v57 = vpop.f32.mrf.mxu1 }
 0x187   : > { %v2605_v63 = vadd.f32 %v2530_v56, %v2385_v58 }
 0x188   : > { %v2532_v60 = vpop.f32.mrf.mxu0  ;;  %v2765_v61 = vpop.f32.mrf.mxu1 }
 0x189   : > { %v2771_v1 = vadd.f32 %v2765_v61, %v2607_v59  ;;  %v2606_v4 = vadd.f32 %v2532_v60, %v2387_v62 }
 0x18a   : > { %v2694_v2 = vpop.f32.mrf.mxu0  ;;  %v3141_v3 = vpop.f32.mrf.mxu1 }
 0x18b   : > { %v2774_v5 = vadd.f32 %v2771_v1, %v3553_v16  ;;  %v2769_v6 = vadd.f32 %v2694_v2, %v2605_v63 }
 0x18c   : > { %v2696_v7 = vpop.f32.mrf.mxu0 }
 0x18d   : > { %v2817_v8 = vmul.f32 %v3551_v14, %v2774_v5  ;;  %v2772_v9 = vadd.f32 %v2769_v6, %v3553_v16  ;;  %v2770_v10 = vadd.f32 %v2696_v7, %v2606_v4 }
 0x18f   : > { %v2820_v11 = vadd.f32 %v2817_v8, %v3557_v25  ;;  %v2815_v12 = vmul.f32 %v3551_v14, %v2772_v9  ;;  %v2773_v13 = vadd.f32 %v2770_v10, %v3553_v16 }
 0x191   : > { %3027 = vst.msk [vmem:[%s3563_s8 + $0x58] sm:$0xff] %vm2793_vm11, %v2820_v11  ;;  %v2818_v15 = vadd.f32 %v2815_v12, %v3557_v25  ;;  %v2816_v0 = vmul.f32 %v3551_v14, %v2773_v13 }
 0x193   : > { %3025 = vst [vmem:[%s3563_s8 + $0x48] sm:$0xff] %v2818_v15  ;;  %v2819_v17 = vadd.f32 %v2816_v0, %v3557_v25 }
 0x195   : > { %3026 = vst [vmem:[%s3563_s8 + $0x50] sm:$0xff] %v2819_v17 }
 0x196 PF: > { %s15_s20 = sadd.s32 1, %s3203_s20   ;;  %s3630_s18 = smov %s3199_s19 }
 0x197   : > { %p12_p5 = scmp.ge.s32.totalorder %s15_s20, 4   ;;  %s3631_s19 = smov %s3633_s21 }
 0x199   :  { %14 = sbr.rel (!%p12_p5) target bundleno = 2 (0x2), region = 88 }

</bundles_post_ra>
